<compile_context>
chip_gen: v6e
topology: v6e:2x2x1
jax: 0.10.0
libtpu: 0.0.40
codegen_flags: <defaults>
</compile_context>

<pallas_src>
import functools

import jax
import jax.numpy as jnp
from jax import lax
from jax.experimental import pallas as pl
from jax.experimental.pallas import tpu as pltpu


KERNEL_SIZE = 3
NUM_CHANNELS = [64, 128, 256]

_TL_MAX = 1024                    # L-tile rows (v7x-safe; 2048 ok on v5e/v6e)
_VMEM_LIMIT = 48 * 1024 * 1024    # explicit scoped-VMEM cap (v5e default 16MiB)
_COMPUTE_DTYPE = jnp.bfloat16     # activation / MXU operand dtype (f32 accum)
_SUBLANE = 16                     # bf16 sublane tile -> halo alignment


def _round_up(x, m):
    return (x + m - 1) // m * m


def _dilated_conv_mm(xa, w_ref, *, off, n, K, d):
    """Dilated conv as MXU matmul(s).

    xa    : (rows, C_in) bf16 window; tap k reads rows [off+k*d, off+k*d+n).
    w_ref : (K*C_in, C_out) bf16 weights in im2col layout.
    Returns (n, C_out) f32 pre-bias conv output.
    """
    C_in = xa.shape[1]
    if C_in % 128 == 0:
        # Wide channels: lane-aligned im2col concat, one matmul
        # (contraction K*C_in = 384 / 768 keeps the MXU busy).
        cin = jnp.concatenate(
            [xa[off + k * d:off + k * d + n, :] for k in range(K)], axis=-1)
        return jnp.dot(cin, w_ref[...], preferred_element_type=jnp.float32)
    # Narrow channels (4 / 64): a lane concat would force lane relayout for a
    # contraction that cannot fill the MXU anyway -> K accumulated matmuls.
    w = w_ref[...]
    acc = jnp.dot(xa[off:off + n, :], w[:C_in, :],
                  preferred_element_type=jnp.float32)
    for k in range(1, K):
        acc = acc + jnp.dot(xa[off + k * d:off + k * d + n, :],
                            w[k * C_in:(k + 1) * C_in, :],
                            preferred_element_type=jnp.float32)
    return acc


# ---------------------------------------------------------------------------
# Fused TemporalBlock kernel
# ---------------------------------------------------------------------------
def _temporal_block_kernel(*refs, K, d, TL, HA, L, L1, has_halo):
    """One (batch, L-tile) step of a fused TemporalBlock.

    x_ref  : (1, TL, C_in)   rows [t0, t0+TL)                  (bf16)
    xh_ref : (1, HA, C_in)   rows [t0-HA, t0)  (tiled path only, bf16)
    w1_ref : (K*C_in, C_out) conv1 weights, im2col layout      (bf16)
    w2_ref : (K*C_out,C_out) conv2 weights, im2col layout      (bf16)
    wd_ref : (C_in, C_out)   1x1 downsample weights            (bf16)
    b*_ref : (1, C_out)      biases                            (f32)
    o_ref  : (1, TL, C_out)  block output rows [t0, t0+TL)     (bf16)
    """
    if has_halo:
        (x_ref, xh_ref, w1_ref, b1_ref, w2_ref, b2_ref,
         wd_ref, bd_ref, o_ref) = refs
    else:
        (x_ref, w1_ref, b1_ref, w2_ref, b2_ref,
         wd_ref, bd_ref, o_ref) = refs
        xh_ref = None

    h = (K - 1) * d
    j = pl.program_id(1)
    t0 = j * TL

    x_tile = x_ref[0]                                 # (TL, C_in) bf16
    C_in = x_tile.shape[1]

    if has_halo:
        xh = xh_ref[0]                                # (HA, C_in) bf16
        # rows with negative global index are conv1's left zero padding
        g_idx = t0 - HA + lax.broadcasted_iota(jnp.int32, (HA, 1), 0)
        xh = jnp.where(g_idx >= 0, xh, jnp.zeros_like(xh))
    else:
        xh = jnp.zeros((HA, C_in), x_tile.dtype)      # single tile: t0 == 0

    # sublane-aligned (HA % 16 == 0) concat -> free placement
    xa = jnp.concatenate([xh, x_tile], axis=0)        # (HA+TL, C_in) bf16

    # ---- conv1 + ReLU at positions s = t0 - h + r, r in [0, TL + h) --------
    n1 = TL + h
    c1 = _dilated_conv_mm(xa, w1_ref, off=HA - 2 * h, n=n1, K=K, d=d)
    c1 = jnp.maximum(c1 + b1_ref[...], 0.0)
    # positions outside conv1's output range [0, L1) are conv2's zero padding
    s_idx = t0 - h + lax.broadcasted_iota(jnp.int32, (n1, 1), 0)
    c1 = jnp.where((s_idx >= 0) & (s_idx < L1), c1, 0.0)
    c1 = c1.astype(x_tile.dtype)          # bf16 (matches reference quant point)
    # dropout1: eval-mode identity

    # ---- conv2 + ReLU at output positions t = t0 + q, q in [0, TL) ---------
    c2 = _dilated_conv_mm(c1, w2_ref, off=0, n=TL, K=K, d=d)
    c2 = jnp.maximum(c2 + b2_ref[...], 0.0)
    # dropout2: eval-mode identity

    # ---- residual: 1x1 downsample of x, zero beyond input length L --------
    # Kept as a separate matmul: relu2 must apply to conv2 BEFORE the residual
    # add (fusing wd into the conv2 matmul would change the semantics).
    res = jnp.dot(x_tile, wd_ref[...], preferred_element_type=jnp.float32)
    res = res + bd_ref[...]
    t_idx = t0 + lax.broadcasted_iota(jnp.int32, (TL, 1), 0)
    res = jnp.where(t_idx < L, res, 0.0)

    o_ref[0] = jnp.maximum(c2 + res, 0.0).astype(o_ref.dtype)


# ---------------------------------------------------------------------------
# Wrapper around pallas_call for one TemporalBlock
# ---------------------------------------------------------------------------
def temporal_block_pallas(x_nlc, blk):
    """Fused TemporalBlock.  x_nlc: (N, L, C_in) -> (N, L + 2*(K-1)*d, C_out)."""
    N, L, C_in = x_nlc.shape
    w1, w2, wd = blk["w1"], blk["w2"], blk["wd"]
    K, _, C_out = w1.shape
    d = blk["dilation"]
    h = (K - 1) * d
    L1, L2 = L + h, L + 2 * h
    HA = _round_up(2 * h, _SUBLANE)          # sublane-aligned halo rows

    if L2 <= _TL_MAX:                        # one tile covers the whole output
        TL, J, has_halo = L2, 1, False       # -> no halo DMA at all
    else:
        TL, has_halo = _TL_MAX, True
        J = pl.cdiv(L2, TL)
        assert 2 * h <= HA <= TL and TL % HA == 0, (h, HA, TL)
    Lx = J * TL

    # One right-edge pad so every DMA'd x block is in bounds; the zero rows
    # double as the convs' right padding.  All other padding is in-kernel.
    x_pad = jnp.pad(x_nlc.astype(_COMPUTE_DTYPE), ((0, 0), (0, Lx - L), (0, 0)))

    w1_2d = w1.reshape(K * C_in, C_out).astype(_COMPUTE_DTYPE)
    w2_2d = w2.reshape(K * C_out, C_out).astype(_COMPUTE_DTYPE)
    wd_2d = wd.reshape(C_in, C_out).astype(_COMPUTE_DTYPE)
    b1 = blk["b1"].reshape(1, C_out).astype(jnp.float32)
    b2 = blk["b2"].reshape(1, C_out).astype(jnp.float32)
    bd = blk["bd"].reshape(1, C_out).astype(jnp.float32)

    kern = functools.partial(_temporal_block_kernel, K=K, d=d, TL=TL, HA=HA,
                             L=L, L1=L1, has_halo=has_halo)

    in_specs = [pl.BlockSpec((1, TL, C_in), lambda n, j: (n, j, 0))]
    operands = [x_pad]
    if has_halo:
        R = TL // HA
        # halo: the HA-row block ending at the tile start (clamped at j=0; the
        # kernel zeroes all rows with negative global index anyway).
        in_specs.append(pl.BlockSpec(
            (1, HA, C_in), lambda n, j: (n, jnp.maximum(j * R - 1, 0), 0)))
        operands.append(x_pad)
    in_specs += [
        pl.BlockSpec((K * C_in, C_out), lambda n, j: (0, 0)),
        pl.BlockSpec((1, C_out), lambda n, j: (0, 0)),
        pl.BlockSpec((K * C_out, C_out), lambda n, j: (0, 0)),
        pl.BlockSpec((1, C_out), lambda n, j: (0, 0)),
        pl.BlockSpec((C_in, C_out), lambda n, j: (0, 0)),
        pl.BlockSpec((1, C_out), lambda n, j: (0, 0)),
    ]
    operands += [w1_2d, b1, w2_2d, b2, wd_2d, bd]

    flops = 2 * N * J * TL * C_out * (K * C_in + K * C_out + C_in)
    bytes_accessed = 2 * (N * Lx * C_in + N * L2 * C_out) + 2 * (
        K * C_in * C_out + K * C_out * C_out + C_in * C_out)

    return pl.pallas_call(
        kern,
        out_shape=jax.ShapeDtypeStruct((N, L2, C_out), _COMPUTE_DTYPE),
        grid=(N, J),
        in_specs=in_specs,
        out_specs=pl.BlockSpec((1, TL, C_out), lambda n, j: (n, j, 0)),
        compiler_params=pltpu.CompilerParams(
            dimension_semantics=("parallel", "parallel"),
            vmem_limit_bytes=_VMEM_LIMIT),
        cost_estimate=pl.CostEstimate(flops=flops, transcendentals=0,
                                      bytes_accessed=bytes_accessed),
    )(*operands)


# ---------------------------------------------------------------------------
# Model: parameter init + forward
# ---------------------------------------------------------------------------
def init_tcn_params(key, input_size, num_channels, kernel_size):
    """Deterministic synthetic parameters (shapes match nn.Conv1d)."""
    params = []
    for i, out_ch in enumerate(num_channels):
        in_ch = input_size if i == 0 else num_channels[i - 1]
        key, k1, k2, k3, k4, k5, k6 = jax.random.split(key, 7)
        params.append(dict(
            w1=jax.random.normal(k1, (kernel_size, in_ch, out_ch), jnp.float32) * 0.05,
            b1=jax.random.normal(k2, (out_ch,), jnp.float32) * 0.05,
            w2=jax.random.normal(k3, (kernel_size, out_ch, out_ch), jnp.float32) * 0.05,
            b2=jax.random.normal(k4, (out_ch,), jnp.float32) * 0.05,
            # 1x1 downsample (in_ch != out_ch at every level of this config).
            wd=jax.random.normal(k5, (1, in_ch, out_ch), jnp.float32) * 0.05,
            bd=jax.random.normal(k6, (out_ch,), jnp.float32) * 0.05,
            dilation=2 ** i,
        ))
    return params


def temporal_conv_net_forward(x_ncl, params):
    """x_ncl: (N, C_in, L) PyTorch layout -> (N, C_out, L_out), float32."""
    x = jnp.transpose(x_ncl, (0, 2, 1))      # -> (N, L, C)
    for blk in params:
        x = temporal_block_pallas(x, blk)
    return jnp.transpose(x, (0, 2, 1)).astype(jnp.float32)


# ---------------------------------------------------------------------------
# Pure-JAX reference (mirrors the kernel's bf16 quantisation points)
# ---------------------------------------------------------------------------
def _conv1d_ref(x_ncl, w_kio, b, dilation, padding):
    w = jnp.transpose(w_kio, (2, 1, 0))      # (K, C_in, C_out) -> (C_out, C_in, K)
    y = lax.conv_general_dilated(
        x_ncl, w, window_strides=(1,), padding=[(padding, padding)],
        rhs_dilation=(dilation,), dimension_numbers=("NCH", "OIH", "NCH"),
        precision=lax.Precision.HIGHEST)
    return y + b[None, :, None]


def _tcn_ref(x_ncl, params):
    q = lambda a: a.astype(_COMPUTE_DTYPE).astype(jnp.float32)   # bf16 rounding
    x = q(x_ncl)
    for blk in params:
        k, d = blk["w1"].shape[0], blk["dilation"]
        p = (k - 1) * d
        out = jnp.maximum(_conv1d_ref(x, q(blk["w1"]), blk["b1"], d, p), 0.0)
        out = q(out)                                  # kernel feeds conv2 in bf16
        out = jnp.maximum(_conv1d_ref(out, q(blk["w2"]), blk["b2"], d, p), 0.0)
        res = _conv1d_ref(x, q(blk["wd"]), blk["bd"], 1, 0)
        diff = out.shape[2] - res.shape[2]
        res = jnp.pad(res, ((0, 0), (0, 0), (0, diff)))
        x = q(jnp.maximum(out + res, 0.0))            # kernel writes bf16 blocks
    return x.astype(jnp.float32)


# ---------------------------------------------------------------------------
if __name__ == "__main__":
    key = jax.random.PRNGKey(0)
    k_params, k_x1, k_x2 = jax.random.split(key, 3)

    C_IN = 4
    params = init_tcn_params(k_params, C_IN, NUM_CHANNELS, KERNEL_SIZE)
    fwd = jax.jit(lambda inp: temporal_conv_net_forward(inp, params))

    # Small shapes (single-tile path), PyTorch NCL layout.
    x_small = jax.random.normal(k_x1, (2, C_IN, 16), jnp.float32)
    y = jax.block_until_ready(fwd(x_small))
    y_ref = jax.block_until_ready(_tcn_ref(x_small, params))
    assert y.shape == y_ref.shape, (y.shape, y_ref.shape)
    err_s = float(jnp.max(jnp.abs(y - y_ref)))
    assert jnp.allclose(y, y_ref, atol=5e-3, rtol=3e-2), f"max abs err {err_s}"

    # Longer sequence: exercises the L-tiled grid + 16-row halo path.
    x_long = jax.random.normal(k_x2, (1, C_IN, 1200), jnp.float32)
    y2 = jax.block_until_ready(fwd(x_long))
    y2_ref = jax.block_until_ready(_tcn_ref(x_long, params))
    assert y2.shape == y2_ref.shape, (y2.shape, y2_ref.shape)
    err_l = float(jnp.max(jnp.abs(y2 - y2_ref)))
    assert jnp.allclose(y2, y2_ref, atol=5e-3, rtol=3e-2), f"max abs err {err_l}"

    print("KERNEL_OK")
</pallas_src>

<mosaic_0001>
module attributes {stable_mosaic.version = 11 : i64} {
  func.func @_temporal_block_kernel(%arg0: i32, %arg1: i32, %arg2: memref<1x20x4xbf16, #tpu.memory_space<vmem>>, %arg3: memref<12x64xbf16, #tpu.memory_space<vmem>>, %arg4: memref<1x64xf32, #tpu.memory_space<vmem>>, %arg5: memref<192x64xbf16, #tpu.memory_space<vmem>>, %arg6: memref<1x64xf32, #tpu.memory_space<vmem>>, %arg7: memref<4x64xbf16, #tpu.memory_space<vmem>>, %arg8: memref<1x64xf32, #tpu.memory_space<vmem>>, %arg9: memref<1x20x64xbf16, #tpu.memory_space<vmem>>) attributes {dimension_semantics = [#tpu.dimension_semantics<parallel>, #tpu.dimension_semantics<parallel>], iteration_bounds = array<i64: 2, 1>, scalar_prefetch = 0 : i64, scratch_operands = 0 : i64, tpu.core_type = #tpu.core_type<tc>, window_params = [{transform_indices = @transform_0, window_bounds = array<i64: 1, 20, 4>}, {pipeline_mode = #tpu.pipeline_mode<synchronous>, transform_indices = @transform_1, window_bounds = array<i64: 12, 64>}, {pipeline_mode = #tpu.pipeline_mode<synchronous>, transform_indices = @transform_2, window_bounds = array<i64: 1, 64>}, {pipeline_mode = #tpu.pipeline_mode<synchronous>, transform_indices = @transform_3, window_bounds = array<i64: 192, 64>}, {pipeline_mode = #tpu.pipeline_mode<synchronous>, transform_indices = @transform_4, window_bounds = array<i64: 1, 64>}, {pipeline_mode = #tpu.pipeline_mode<synchronous>, transform_indices = @transform_5, window_bounds = array<i64: 4, 64>}, {pipeline_mode = #tpu.pipeline_mode<synchronous>, transform_indices = @transform_6, window_bounds = array<i64: 1, 64>}, {transform_indices = @transform_7, window_bounds = array<i64: 1, 20, 64>}]} {
    %c20_i32 = arith.constant 20 : i32
    %0 = arith.muli %arg1, %c20_i32 : i32
    %c0 = arith.constant 0 : index
    %c0_0 = arith.constant 0 : index
    %c0_1 = arith.constant 0 : index
    %1 = vector.load %arg2[%c0, %c0_0, %c0_1] : memref<1x20x4xbf16, #tpu.memory_space<vmem>>, vector<1x20x4xbf16>
    %2 = vector.shape_cast %1 : vector<1x20x4xbf16> to vector<20x4xbf16>
    %cst = arith.constant 0.000000e+00 : bf16
    %3 = vector.broadcast %cst : bf16 to vector<16x4xbf16>
    %4 = tpu.concatenate %3, %2 in 0 : vector<16x4xbf16>, vector<20x4xbf16> -> vector<36x4xbf16>
    %c0_2 = arith.constant 0 : index
    %c0_3 = arith.constant 0 : index
    %5 = vector.load %arg3[%c0_2, %c0_3] : memref<12x64xbf16, #tpu.memory_space<vmem>>, vector<12x64xbf16>
    %6 = vector.extract_strided_slice %4 {offsets = [12, 0], sizes = [22, 4], strides = [1, 1]} : vector<36x4xbf16> to vector<22x4xbf16>
    %7 = vector.extract_strided_slice %5 {offsets = [0, 0], sizes = [4, 64], strides = [1, 1]} : vector<12x64xbf16> to vector<4x64xbf16>
    %cst_4 = arith.constant dense<0.000000e+00> : vector<22x64xf32>
    %8 = tpu.matmul %6, %7, %cst_4 {dimension_numbers = #tpu.dot_dimension_numbers<[1], [0], [0], [1], [0, 0, 1, 1], [], []>} : vector<22x4xbf16>, vector<4x64xbf16>, vector<22x64xf32> -> vector<22x64xf32>
    %9 = vector.extract_strided_slice %4 {offsets = [13, 0], sizes = [22, 4], strides = [1, 1]} : vector<36x4xbf16> to vector<22x4xbf16>
    %10 = vector.extract_strided_slice %5 {offsets = [4, 0], sizes = [4, 64], strides = [1, 1]} : vector<12x64xbf16> to vector<4x64xbf16>
    %cst_5 = arith.constant dense<0.000000e+00> : vector<22x64xf32>
    %11 = tpu.matmul %9, %10, %cst_5 {dimension_numbers = #tpu.dot_dimension_numbers<[1], [0], [0], [1], [0, 0, 1, 1], [], []>} : vector<22x4xbf16>, vector<4x64xbf16>, vector<22x64xf32> -> vector<22x64xf32>
    %12 = arith.addf %8, %11 : vector<22x64xf32>
    %13 = vector.extract_strided_slice %4 {offsets = [14, 0], sizes = [22, 4], strides = [1, 1]} : vector<36x4xbf16> to vector<22x4xbf16>
    %14 = vector.extract_strided_slice %5 {offsets = [8, 0], sizes = [4, 64], strides = [1, 1]} : vector<12x64xbf16> to vector<4x64xbf16>
    %cst_6 = arith.constant dense<0.000000e+00> : vector<22x64xf32>
    %15 = tpu.matmul %13, %14, %cst_6 {dimension_numbers = #tpu.dot_dimension_numbers<[1], [0], [0], [1], [0, 0, 1, 1], [], []>} : vector<22x4xbf16>, vector<4x64xbf16>, vector<22x64xf32> -> vector<22x64xf32>
    %16 = arith.addf %12, %15 : vector<22x64xf32>
    %c0_7 = arith.constant 0 : index
    %c0_8 = arith.constant 0 : index
    %17 = vector.load %arg4[%c0_7, %c0_8] : memref<1x64xf32, #tpu.memory_space<vmem>>, vector<1x64xf32>
    %18 = vector.broadcast %17 : vector<1x64xf32> to vector<22x64xf32>
    %19 = arith.addf %16, %18 : vector<22x64xf32>
    %cst_9 = arith.constant 0.000000e+00 : f32
    %20 = vector.broadcast %cst_9 : f32 to vector<22x64xf32>
    %21 = arith.maximumf %19, %20 : vector<22x64xf32>
    %c2_i32 = arith.constant 2 : i32
    %22 = arith.subi %0, %c2_i32 : i32
    %23 = tpu.iota {dimensions = array<i32: 0>} : vector<22x1xi32>
    %24 = vector.broadcast %22 : i32 to vector<22x1xi32>
    %25 = arith.addi %24, %23 : vector<22x1xi32>
    %c0_i32 = arith.constant 0 : i32
    %26 = vector.broadcast %c0_i32 : i32 to vector<22x1xi32>
    %27 = arith.cmpi sge, %25, %26 : vector<22x1xi32>
    %c18_i32 = arith.constant 18 : i32
    %28 = vector.broadcast %c18_i32 : i32 to vector<22x1xi32>
    %29 = arith.cmpi slt, %25, %28 : vector<22x1xi32>
    %30 = arith.andi %27, %29 : vector<22x1xi1>
    %cst_10 = arith.constant 0.000000e+00 : f32
    %31 = vector.shape_cast %30 : vector<22x1xi1> to vector<22x1xi1>
    %32 = vector.broadcast %31 : vector<22x1xi1> to vector<22x64xi1>
    %33 = vector.broadcast %cst_10 : f32 to vector<22x64xf32>
    %34 = arith.select %32, %21, %33 : vector<22x64xi1>, vector<22x64xf32>
    %35 = arith.truncf %34 : vector<22x64xf32> to vector<22x64xbf16>
    %c0_11 = arith.constant 0 : index
    %c0_12 = arith.constant 0 : index
    %36 = vector.load %arg5[%c0_11, %c0_12] : memref<192x64xbf16, #tpu.memory_space<vmem>>, vector<192x64xbf16>
    %37 = vector.extract_strided_slice %35 {offsets = [0, 0], sizes = [20, 64], strides = [1, 1]} : vector<22x64xbf16> to vector<20x64xbf16>
    %38 = vector.extract_strided_slice %36 {offsets = [0, 0], sizes = [64, 64], strides = [1, 1]} : vector<192x64xbf16> to vector<64x64xbf16>
    %cst_13 = arith.constant dense<0.000000e+00> : vector<20x64xf32>
    %39 = tpu.matmul %37, %38, %cst_13 {dimension_numbers = #tpu.dot_dimension_numbers<[1], [0], [0], [1], [0, 0, 1, 1], [], []>} : vector<20x64xbf16>, vector<64x64xbf16>, vector<20x64xf32> -> vector<20x64xf32>
    %40 = vector.extract_strided_slice %35 {offsets = [1, 0], sizes = [20, 64], strides = [1, 1]} : vector<22x64xbf16> to vector<20x64xbf16>
    %41 = vector.extract_strided_slice %36 {offsets = [64, 0], sizes = [64, 64], strides = [1, 1]} : vector<192x64xbf16> to vector<64x64xbf16>
    %cst_14 = arith.constant dense<0.000000e+00> : vector<20x64xf32>
    %42 = tpu.matmul %40, %41, %cst_14 {dimension_numbers = #tpu.dot_dimension_numbers<[1], [0], [0], [1], [0, 0, 1, 1], [], []>} : vector<20x64xbf16>, vector<64x64xbf16>, vector<20x64xf32> -> vector<20x64xf32>
    %43 = arith.addf %39, %42 : vector<20x64xf32>
    %44 = vector.extract_strided_slice %35 {offsets = [2, 0], sizes = [20, 64], strides = [1, 1]} : vector<22x64xbf16> to vector<20x64xbf16>
    %45 = vector.extract_strided_slice %36 {offsets = [128, 0], sizes = [64, 64], strides = [1, 1]} : vector<192x64xbf16> to vector<64x64xbf16>
    %cst_15 = arith.constant dense<0.000000e+00> : vector<20x64xf32>
    %46 = tpu.matmul %44, %45, %cst_15 {dimension_numbers = #tpu.dot_dimension_numbers<[1], [0], [0], [1], [0, 0, 1, 1], [], []>} : vector<20x64xbf16>, vector<64x64xbf16>, vector<20x64xf32> -> vector<20x64xf32>
    %47 = arith.addf %43, %46 : vector<20x64xf32>
    %c0_16 = arith.constant 0 : index
    %c0_17 = arith.constant 0 : index
    %48 = vector.load %arg6[%c0_16, %c0_17] : memref<1x64xf32, #tpu.memory_space<vmem>>, vector<1x64xf32>
    %49 = vector.broadcast %48 : vector<1x64xf32> to vector<20x64xf32>
    %50 = arith.addf %47, %49 : vector<20x64xf32>
    %cst_18 = arith.constant 0.000000e+00 : f32
    %51 = vector.broadcast %cst_18 : f32 to vector<20x64xf32>
    %52 = arith.maximumf %50, %51 : vector<20x64xf32>
    %c0_19 = arith.constant 0 : index
    %c0_20 = arith.constant 0 : index
    %53 = vector.load %arg7[%c0_19, %c0_20] : memref<4x64xbf16, #tpu.memory_space<vmem>>, vector<4x64xbf16>
    %cst_21 = arith.constant dense<0.000000e+00> : vector<20x64xf32>
    %54 = tpu.matmul %2, %53, %cst_21 {dimension_numbers = #tpu.dot_dimension_numbers<[1], [0], [0], [1], [0, 0, 1, 1], [], []>} : vector<20x4xbf16>, vector<4x64xbf16>, vector<20x64xf32> -> vector<20x64xf32>
    %c0_22 = arith.constant 0 : index
    %c0_23 = arith.constant 0 : index
    %55 = vector.load %arg8[%c0_22, %c0_23] : memref<1x64xf32, #tpu.memory_space<vmem>>, vector<1x64xf32>
    %56 = vector.broadcast %55 : vector<1x64xf32> to vector<20x64xf32>
    %57 = arith.addf %54, %56 : vector<20x64xf32>
    %58 = tpu.iota {dimensions = array<i32: 0>} : vector<20x1xi32>
    %59 = vector.broadcast %0 : i32 to vector<20x1xi32>
    %60 = arith.addi %59, %58 : vector<20x1xi32>
    %c16_i32 = arith.constant 16 : i32
    %61 = vector.broadcast %c16_i32 : i32 to vector<20x1xi32>
    %62 = arith.cmpi slt, %60, %61 : vector<20x1xi32>
    %cst_24 = arith.constant 0.000000e+00 : f32
    %63 = vector.shape_cast %62 : vector<20x1xi1> to vector<20x1xi1>
    %64 = vector.broadcast %63 : vector<20x1xi1> to vector<20x64xi1>
    %65 = vector.broadcast %cst_24 : f32 to vector<20x64xf32>
    %66 = arith.select %64, %57, %65 : vector<20x64xi1>, vector<20x64xf32>
    %67 = arith.addf %52, %66 : vector<20x64xf32>
    %cst_25 = arith.constant 0.000000e+00 : f32
    %68 = vector.broadcast %cst_25 : f32 to vector<20x64xf32>
    %69 = arith.maximumf %67, %68 : vector<20x64xf32>
    %70 = arith.truncf %69 : vector<20x64xf32> to vector<20x64xbf16>
    %c0_26 = arith.constant 0 : index
    %c0_27 = arith.constant 0 : index
    %c0_28 = arith.constant 0 : index
    %71 = vector.load %arg9[%c0_26, %c0_27, %c0_28] : memref<1x20x64xbf16, #tpu.memory_space<vmem>>, vector<1x20x64xbf16>
    %72 = vector.shape_cast %71 : vector<1x20x64xbf16> to vector<20x64xbf16>
    %73 = vector.shape_cast %70 : vector<20x64xbf16> to vector<1x20x64xbf16>
    tpu.vector_store %arg9[%c0_26, %c0_27, %c0_28], %73 {strides = array<i32>} : memref<1x20x64xbf16, #tpu.memory_space<vmem>>, vector<1x20x64xbf16>,
    return
  }
  func.func @transform_0(%arg0: i32, %arg1: i32) -> (i32, i32, i32) {
    %c0_i32 = arith.constant 0 : i32
    %c0_i32_0 = arith.constant 0 : i32
    return %arg0, %arg1, %c0_i32 : i32, i32, i32
  }
  func.func @transform_1(%arg0: i32, %arg1: i32) -> (i32, i32) {
    %c0_i32 = arith.constant 0 : i32
    %c0_i32_0 = arith.constant 0 : i32
    %c0_i32_1 = arith.constant 0 : i32
    return %c0_i32, %c0_i32_0 : i32, i32
  }
  func.func @transform_2(%arg0: i32, %arg1: i32) -> (i32, i32) {
    %c0_i32 = arith.constant 0 : i32
    %c0_i32_0 = arith.constant 0 : i32
    %c0_i32_1 = arith.constant 0 : i32
    return %c0_i32, %c0_i32_0 : i32, i32
  }
  func.func @transform_3(%arg0: i32, %arg1: i32) -> (i32, i32) {
    %c0_i32 = arith.constant 0 : i32
    %c0_i32_0 = arith.constant 0 : i32
    %c0_i32_1 = arith.constant 0 : i32
    return %c0_i32, %c0_i32_0 : i32, i32
  }
  func.func @transform_4(%arg0: i32, %arg1: i32) -> (i32, i32) {
    %c0_i32 = arith.constant 0 : i32
    %c0_i32_0 = arith.constant 0 : i32
    %c0_i32_1 = arith.constant 0 : i32
    return %c0_i32, %c0_i32_0 : i32, i32
  }
  func.func @transform_5(%arg0: i32, %arg1: i32) -> (i32, i32) {
    %c0_i32 = arith.constant 0 : i32
    %c0_i32_0 = arith.constant 0 : i32
    %c0_i32_1 = arith.constant 0 : i32
    return %c0_i32, %c0_i32_0 : i32, i32
  }
  func.func @transform_6(%arg0: i32, %arg1: i32) -> (i32, i32) {
    %c0_i32 = arith.constant 0 : i32
    %c0_i32_0 = arith.constant 0 : i32
    %c0_i32_1 = arith.constant 0 : i32
    return %c0_i32, %c0_i32_0 : i32, i32
  }
  func.func @transform_7(%arg0: i32, %arg1: i32) -> (i32, i32, i32) {
    %c0_i32 = arith.constant 0 : i32
    %c0_i32_0 = arith.constant 0 : i32
    return %arg0, %arg1, %c0_i32 : i32, i32, i32
  }
}

module attributes {stable_mosaic.version = 11 : i64} {
  func.func @_temporal_block_kernel(%arg0: i32, %arg1: i32, %arg2: memref<1x28x64xbf16, #tpu.memory_space<vmem>>, %arg3: memref<192x128xbf16, #tpu.memory_space<vmem>>, %arg4: memref<1x128xf32, #tpu.memory_space<vmem>>, %arg5: memref<384x128xbf16, #tpu.memory_space<vmem>>, %arg6: memref<1x128xf32, #tpu.memory_space<vmem>>, %arg7: memref<64x128xbf16, #tpu.memory_space<vmem>>, %arg8: memref<1x128xf32, #tpu.memory_space<vmem>>, %arg9: memref<1x28x128xbf16, #tpu.memory_space<vmem>>) attributes {dimension_semantics = [#tpu.dimension_semantics<parallel>, #tpu.dimension_semantics<parallel>], iteration_bounds = array<i64: 2, 1>, scalar_prefetch = 0 : i64, scratch_operands = 0 : i64, tpu.core_type = #tpu.core_type<tc>, window_params = [{transform_indices = @transform_0, window_bounds = array<i64: 1, 28, 64>}, {pipeline_mode = #tpu.pipeline_mode<synchronous>, transform_indices = @transform_1, window_bounds = array<i64: 192, 128>}, {pipeline_mode = #tpu.pipeline_mode<synchronous>, transform_indices = @transform_2, window_bounds = array<i64: 1, 128>}, {pipeline_mode = #tpu.pipeline_mode<synchronous>, transform_indices = @transform_3, window_bounds = array<i64: 384, 128>}, {pipeline_mode = #tpu.pipeline_mode<synchronous>, transform_indices = @transform_4, window_bounds = array<i64: 1, 128>}, {pipeline_mode = #tpu.pipeline_mode<synchronous>, transform_indices = @transform_5, window_bounds = array<i64: 64, 128>}, {pipeline_mode = #tpu.pipeline_mode<synchronous>, transform_indices = @transform_6, window_bounds = array<i64: 1, 128>}, {transform_indices = @transform_7, window_bounds = array<i64: 1, 28, 128>}]} {
    %c28_i32 = arith.constant 28 : i32
    %0 = arith.muli %arg1, %c28_i32 : i32
    %c0 = arith.constant 0 : index
    %c0_0 = arith.constant 0 : index
    %c0_1 = arith.constant 0 : index
    %1 = vector.load %arg2[%c0, %c0_0, %c0_1] : memref<1x28x64xbf16, #tpu.memory_space<vmem>>, vector<1x28x64xbf16>
    %2 = vector.shape_cast %1 : vector<1x28x64xbf16> to vector<28x64xbf16>
    %cst = arith.constant 0.000000e+00 : bf16
    %3 = vector.broadcast %cst : bf16 to vector<16x64xbf16>
    %4 = tpu.concatenate %3, %2 in 0 : vector<16x64xbf16>, vector<28x64xbf16> -> vector<44x64xbf16>
    %c0_2 = arith.constant 0 : index
    %c0_3 = arith.constant 0 : index
    %5 = vector.load %arg3[%c0_2, %c0_3] : memref<192x128xbf16, #tpu.memory_space<vmem>>, vector<192x128xbf16>
    %6 = vector.extract_strided_slice %4 {offsets = [8, 0], sizes = [32, 64], strides = [1, 1]} : vector<44x64xbf16> to vector<32x64xbf16>
    %7 = vector.extract_strided_slice %5 {offsets = [0, 0], sizes = [64, 128], strides = [1, 1]} : vector<192x128xbf16> to vector<64x128xbf16>
    %cst_4 = arith.constant dense<0.000000e+00> : vector<32x128xf32>
    %8 = tpu.matmul %6, %7, %cst_4 {dimension_numbers = #tpu.dot_dimension_numbers<[1], [0], [0], [1], [0, 0, 1, 1], [], []>} : vector<32x64xbf16>, vector<64x128xbf16>, vector<32x128xf32> -> vector<32x128xf32>
    %9 = vector.extract_strided_slice %4 {offsets = [10, 0], sizes = [32, 64], strides = [1, 1]} : vector<44x64xbf16> to vector<32x64xbf16>
    %10 = vector.extract_strided_slice %5 {offsets = [64, 0], sizes = [64, 128], strides = [1, 1]} : vector<192x128xbf16> to vector<64x128xbf16>
    %cst_5 = arith.constant dense<0.000000e+00> : vector<32x128xf32>
    %11 = tpu.matmul %9, %10, %cst_5 {dimension_numbers = #tpu.dot_dimension_numbers<[1], [0], [0], [1], [0, 0, 1, 1], [], []>} : vector<32x64xbf16>, vector<64x128xbf16>, vector<32x128xf32> -> vector<32x128xf32>
    %12 = arith.addf %8, %11 : vector<32x128xf32>
    %13 = vector.extract_strided_slice %4 {offsets = [12, 0], sizes = [32, 64], strides = [1, 1]} : vector<44x64xbf16> to vector<32x64xbf16>
    %14 = vector.extract_strided_slice %5 {offsets = [128, 0], sizes = [64, 128], strides = [1, 1]} : vector<192x128xbf16> to vector<64x128xbf16>
    %cst_6 = arith.constant dense<0.000000e+00> : vector<32x128xf32>
    %15 = tpu.matmul %13, %14, %cst_6 {dimension_numbers = #tpu.dot_dimension_numbers<[1], [0], [0], [1], [0, 0, 1, 1], [], []>} : vector<32x64xbf16>, vector<64x128xbf16>, vector<32x128xf32> -> vector<32x128xf32>
    %16 = arith.addf %12, %15 : vector<32x128xf32>
    %c0_7 = arith.constant 0 : index
    %c0_8 = arith.constant 0 : index
    %17 = vector.load %arg4[%c0_7, %c0_8] : memref<1x128xf32, #tpu.memory_space<vmem>>, vector<1x128xf32>
    %18 = vector.broadcast %17 : vector<1x128xf32> to vector<32x128xf32>
    %19 = arith.addf %16, %18 : vector<32x128xf32>
    %cst_9 = arith.constant 0.000000e+00 : f32
    %20 = vector.broadcast %cst_9 : f32 to vector<32x128xf32>
    %21 = arith.maximumf %19, %20 : vector<32x128xf32>
    %c4_i32 = arith.constant 4 : i32
    %22 = arith.subi %0, %c4_i32 : i32
    %23 = tpu.iota {dimensions = array<i32: 0>} : vector<32x1xi32>
    %24 = vector.broadcast %22 : i32 to vector<32x1xi32>
    %25 = arith.addi %24, %23 : vector<32x1xi32>
    %c0_i32 = arith.constant 0 : i32
    %26 = vector.broadcast %c0_i32 : i32 to vector<32x1xi32>
    %27 = arith.cmpi sge, %25, %26 : vector<32x1xi32>
    %c24_i32 = arith.constant 24 : i32
    %28 = vector.broadcast %c24_i32 : i32 to vector<32x1xi32>
    %29 = arith.cmpi slt, %25, %28 : vector<32x1xi32>
    %30 = arith.andi %27, %29 : vector<32x1xi1>
    %cst_10 = arith.constant 0.000000e+00 : f32
    %31 = vector.shape_cast %30 : vector<32x1xi1> to vector<32x1xi1>
    %32 = vector.broadcast %31 : vector<32x1xi1> to vector<32x128xi1>
    %33 = vector.broadcast %cst_10 : f32 to vector<32x128xf32>
    %34 = arith.select %32, %21, %33 : vector<32x128xi1>, vector<32x128xf32>
    %35 = arith.truncf %34 : vector<32x128xf32> to vector<32x128xbf16>
    %36 = vector.extract_strided_slice %35 {offsets = [0, 0], sizes = [28, 128], strides = [1, 1]} : vector<32x128xbf16> to vector<28x128xbf16>
    %37 = vector.extract_strided_slice %35 {offsets = [2, 0], sizes = [28, 128], strides = [1, 1]} : vector<32x128xbf16> to vector<28x128xbf16>
    %38 = vector.extract_strided_slice %35 {offsets = [4, 0], sizes = [28, 128], strides = [1, 1]} : vector<32x128xbf16> to vector<28x128xbf16>
    %39 = tpu.concatenate %36, %37, %38 in 1 : vector<28x128xbf16>, vector<28x128xbf16>, vector<28x128xbf16> -> vector<28x384xbf16>
    %c0_11 = arith.constant 0 : index
    %c0_12 = arith.constant 0 : index
    %40 = vector.load %arg5[%c0_11, %c0_12] : memref<384x128xbf16, #tpu.memory_space<vmem>>, vector<384x128xbf16>
    %cst_13 = arith.constant dense<0.000000e+00> : vector<28x128xf32>
    %41 = tpu.matmul %39, %40, %cst_13 {dimension_numbers = #tpu.dot_dimension_numbers<[1], [0], [0], [1], [0, 0, 1, 1], [], []>} : vector<28x384xbf16>, vector<384x128xbf16>, vector<28x128xf32> -> vector<28x128xf32>
    %c0_14 = arith.constant 0 : index
    %c0_15 = arith.constant 0 : index
    %42 = vector.load %arg6[%c0_14, %c0_15] : memref<1x128xf32, #tpu.memory_space<vmem>>, vector<1x128xf32>
    %43 = vector.broadcast %42 : vector<1x128xf32> to vector<28x128xf32>
    %44 = arith.addf %41, %43 : vector<28x128xf32>
    %cst_16 = arith.constant 0.000000e+00 : f32
    %45 = vector.broadcast %cst_16 : f32 to vector<28x128xf32>
    %46 = arith.maximumf %44, %45 : vector<28x128xf32>
    %c0_17 = arith.constant 0 : index
    %c0_18 = arith.constant 0 : index
    %47 = vector.load %arg7[%c0_17, %c0_18] : memref<64x128xbf16, #tpu.memory_space<vmem>>, vector<64x128xbf16>
    %cst_19 = arith.constant dense<0.000000e+00> : vector<28x128xf32>
    %48 = tpu.matmul %2, %47, %cst_19 {dimension_numbers = #tpu.dot_dimension_numbers<[1], [0], [0], [1], [0, 0, 1, 1], [], []>} : vector<28x64xbf16>, vector<64x128xbf16>, vector<28x128xf32> -> vector<28x128xf32>
    %c0_20 = arith.constant 0 : index
    %c0_21 = arith.constant 0 : index
    %49 = vector.load %arg8[%c0_20, %c0_21] : memref<1x128xf32, #tpu.memory_space<vmem>>, vector<1x128xf32>
    %50 = vector.broadcast %49 : vector<1x128xf32> to vector<28x128xf32>
    %51 = arith.addf %48, %50 : vector<28x128xf32>
    %52 = tpu.iota {dimensions = array<i32: 0>} : vector<28x1xi32>
    %53 = vector.broadcast %0 : i32 to vector<28x1xi32>
    %54 = arith.addi %53, %52 : vector<28x1xi32>
    %c20_i32 = arith.constant 20 : i32
    %55 = vector.broadcast %c20_i32 : i32 to vector<28x1xi32>
    %56 = arith.cmpi slt, %54, %55 : vector<28x1xi32>
    %cst_22 = arith.constant 0.000000e+00 : f32
    %57 = vector.shape_cast %56 : vector<28x1xi1> to vector<28x1xi1>
    %58 = vector.broadcast %57 : vector<28x1xi1> to vector<28x128xi1>
    %59 = vector.broadcast %cst_22 : f32 to vector<28x128xf32>
    %60 = arith.select %58, %51, %59 : vector<28x128xi1>, vector<28x128xf32>
    %61 = arith.addf %46, %60 : vector<28x128xf32>
    %cst_23 = arith.constant 0.000000e+00 : f32
    %62 = vector.broadcast %cst_23 : f32 to vector<28x128xf32>
    %63 = arith.maximumf %61, %62 : vector<28x128xf32>
    %64 = arith.truncf %63 : vector<28x128xf32> to vector<28x128xbf16>
    %c0_24 = arith.constant 0 : index
    %c0_25 = arith.constant 0 : index
    %c0_26 = arith.constant 0 : index
    %65 = vector.load %arg9[%c0_24, %c0_25, %c0_26] : memref<1x28x128xbf16, #tpu.memory_space<vmem>>, vector<1x28x128xbf16>
    %66 = vector.shape_cast %65 : vector<1x28x128xbf16> to vector<28x128xbf16>
    %67 = vector.shape_cast %64 : vector<28x128xbf16> to vector<1x28x128xbf16>
    tpu.vector_store %arg9[%c0_24, %c0_25, %c0_26], %67 {strides = array<i32>} : memref<1x28x128xbf16, #tpu.memory_space<vmem>>, vector<1x28x128xbf16>,
    return
  }
  func.func @transform_0(%arg0: i32, %arg1: i32) -> (i32, i32, i32) {
    %c0_i32 = arith.constant 0 : i32
    %c0_i32_0 = arith.constant 0 : i32
    return %arg0, %arg1, %c0_i32 : i32, i32, i32
  }
  func.func @transform_1(%arg0: i32, %arg1: i32) -> (i32, i32) {
    %c0_i32 = arith.constant 0 : i32
    %c0_i32_0 = arith.constant 0 : i32
    %c0_i32_1 = arith.constant 0 : i32
    return %c0_i32, %c0_i32_0 : i32, i32
  }
  func.func @transform_2(%arg0: i32, %arg1: i32) -> (i32, i32) {
    %c0_i32 = arith.constant 0 : i32
    %c0_i32_0 = arith.constant 0 : i32
    %c0_i32_1 = arith.constant 0 : i32
    return %c0_i32, %c0_i32_0 : i32, i32
  }
  func.func @transform_3(%arg0: i32, %arg1: i32) -> (i32, i32) {
    %c0_i32 = arith.constant 0 : i32
    %c0_i32_0 = arith.constant 0 : i32
    %c0_i32_1 = arith.constant 0 : i32
    return %c0_i32, %c0_i32_0 : i32, i32
  }
  func.func @transform_4(%arg0: i32, %arg1: i32) -> (i32, i32) {
    %c0_i32 = arith.constant 0 : i32
    %c0_i32_0 = arith.constant 0 : i32
    %c0_i32_1 = arith.constant 0 : i32
    return %c0_i32, %c0_i32_0 : i32, i32
  }
  func.func @transform_5(%arg0: i32, %arg1: i32) -> (i32, i32) {
    %c0_i32 = arith.constant 0 : i32
    %c0_i32_0 = arith.constant 0 : i32
    %c0_i32_1 = arith.constant 0 : i32
    return %c0_i32, %c0_i32_0 : i32, i32
  }
  func.func @transform_6(%arg0: i32, %arg1: i32) -> (i32, i32) {
    %c0_i32 = arith.constant 0 : i32
    %c0_i32_0 = arith.constant 0 : i32
    %c0_i32_1 = arith.constant 0 : i32
    return %c0_i32, %c0_i32_0 : i32, i32
  }
  func.func @transform_7(%arg0: i32, %arg1: i32) -> (i32, i32, i32) {
    %c0_i32 = arith.constant 0 : i32
    %c0_i32_0 = arith.constant 0 : i32
    return %arg0, %arg1, %c0_i32 : i32, i32, i32
  }
}

module attributes {stable_mosaic.version = 11 : i64} {
  func.func @_temporal_block_kernel(%arg0: i32, %arg1: i32, %arg2: memref<1x44x128xbf16, #tpu.memory_space<vmem>>, %arg3: memref<384x256xbf16, #tpu.memory_space<vmem>>, %arg4: memref<1x256xf32, #tpu.memory_space<vmem>>, %arg5: memref<768x256xbf16, #tpu.memory_space<vmem>>, %arg6: memref<1x256xf32, #tpu.memory_space<vmem>>, %arg7: memref<128x256xbf16, #tpu.memory_space<vmem>>, %arg8: memref<1x256xf32, #tpu.memory_space<vmem>>, %arg9: memref<1x44x256xbf16, #tpu.memory_space<vmem>>) attributes {dimension_semantics = [#tpu.dimension_semantics<parallel>, #tpu.dimension_semantics<parallel>], iteration_bounds = array<i64: 2, 1>, scalar_prefetch = 0 : i64, scratch_operands = 0 : i64, tpu.core_type = #tpu.core_type<tc>, window_params = [{transform_indices = @transform_0, window_bounds = array<i64: 1, 44, 128>}, {pipeline_mode = #tpu.pipeline_mode<synchronous>, transform_indices = @transform_1, window_bounds = array<i64: 384, 256>}, {pipeline_mode = #tpu.pipeline_mode<synchronous>, transform_indices = @transform_2, window_bounds = array<i64: 1, 256>}, {pipeline_mode = #tpu.pipeline_mode<synchronous>, transform_indices = @transform_3, window_bounds = array<i64: 768, 256>}, {pipeline_mode = #tpu.pipeline_mode<synchronous>, transform_indices = @transform_4, window_bounds = array<i64: 1, 256>}, {pipeline_mode = #tpu.pipeline_mode<synchronous>, transform_indices = @transform_5, window_bounds = array<i64: 128, 256>}, {pipeline_mode = #tpu.pipeline_mode<synchronous>, transform_indices = @transform_6, window_bounds = array<i64: 1, 256>}, {transform_indices = @transform_7, window_bounds = array<i64: 1, 44, 256>}]} {
    %c44_i32 = arith.constant 44 : i32
    %0 = arith.muli %arg1, %c44_i32 : i32
    %c0 = arith.constant 0 : index
    %c0_0 = arith.constant 0 : index
    %c0_1 = arith.constant 0 : index
    %1 = vector.load %arg2[%c0, %c0_0, %c0_1] : memref<1x44x128xbf16, #tpu.memory_space<vmem>>, vector<1x44x128xbf16>
    %2 = vector.shape_cast %1 : vector<1x44x128xbf16> to vector<44x128xbf16>
    %cst = arith.constant 0.000000e+00 : bf16
    %3 = vector.broadcast %cst : bf16 to vector<16x128xbf16>
    %4 = tpu.concatenate %3, %2 in 0 : vector<16x128xbf16>, vector<44x128xbf16> -> vector<60x128xbf16>
    %5 = vector.extract_strided_slice %4 {offsets = [0, 0], sizes = [52, 128], strides = [1, 1]} : vector<60x128xbf16> to vector<52x128xbf16>
    %6 = vector.extract_strided_slice %4 {offsets = [4, 0], sizes = [52, 128], strides = [1, 1]} : vector<60x128xbf16> to vector<52x128xbf16>
    %7 = vector.extract_strided_slice %4 {offsets = [8, 0], sizes = [52, 128], strides = [1, 1]} : vector<60x128xbf16> to vector<52x128xbf16>
    %8 = tpu.concatenate %5, %6, %7 in 1 : vector<52x128xbf16>, vector<52x128xbf16>, vector<52x128xbf16> -> vector<52x384xbf16>
    %c0_2 = arith.constant 0 : index
    %c0_3 = arith.constant 0 : index
    %9 = vector.load %arg3[%c0_2, %c0_3] : memref<384x256xbf16, #tpu.memory_space<vmem>>, vector<384x256xbf16>
    %cst_4 = arith.constant dense<0.000000e+00> : vector<52x256xf32>
    %10 = tpu.matmul %8, %9, %cst_4 {dimension_numbers = #tpu.dot_dimension_numbers<[1], [0], [0], [1], [0, 0, 1, 1], [], []>} : vector<52x384xbf16>, vector<384x256xbf16>, vector<52x256xf32> -> vector<52x256xf32>
    %c0_5 = arith.constant 0 : index
    %c0_6 = arith.constant 0 : index
    %11 = vector.load %arg4[%c0_5, %c0_6] : memref<1x256xf32, #tpu.memory_space<vmem>>, vector<1x256xf32>
    %12 = vector.broadcast %11 : vector<1x256xf32> to vector<52x256xf32>
    %13 = arith.addf %10, %12 : vector<52x256xf32>
    %cst_7 = arith.constant 0.000000e+00 : f32
    %14 = vector.broadcast %cst_7 : f32 to vector<52x256xf32>
    %15 = arith.maximumf %13, %14 : vector<52x256xf32>
    %c8_i32 = arith.constant 8 : i32
    %16 = arith.subi %0, %c8_i32 : i32
    %17 = tpu.iota {dimensions = array<i32: 0>} : vector<52x1xi32>
    %18 = vector.broadcast %16 : i32 to vector<52x1xi32>
    %19 = arith.addi %18, %17 : vector<52x1xi32>
    %c0_i32 = arith.constant 0 : i32
    %20 = vector.broadcast %c0_i32 : i32 to vector<52x1xi32>
    %21 = arith.cmpi sge, %19, %20 : vector<52x1xi32>
    %c36_i32 = arith.constant 36 : i32
    %22 = vector.broadcast %c36_i32 : i32 to vector<52x1xi32>
    %23 = arith.cmpi slt, %19, %22 : vector<52x1xi32>
    %24 = arith.andi %21, %23 : vector<52x1xi1>
    %cst_8 = arith.constant 0.000000e+00 : f32
    %25 = vector.shape_cast %24 : vector<52x1xi1> to vector<52x1xi1>
    %26 = vector.broadcast %25 : vector<52x1xi1> to vector<52x256xi1>
    %27 = vector.broadcast %cst_8 : f32 to vector<52x256xf32>
    %28 = arith.select %26, %15, %27 : vector<52x256xi1>, vector<52x256xf32>
    %29 = arith.truncf %28 : vector<52x256xf32> to vector<52x256xbf16>
    %30 = vector.extract_strided_slice %29 {offsets = [0, 0], sizes = [44, 256], strides = [1, 1]} : vector<52x256xbf16> to vector<44x256xbf16>
    %31 = vector.extract_strided_slice %29 {offsets = [4, 0], sizes = [44, 256], strides = [1, 1]} : vector<52x256xbf16> to vector<44x256xbf16>
    %32 = vector.extract_strided_slice %29 {offsets = [8, 0], sizes = [44, 256], strides = [1, 1]} : vector<52x256xbf16> to vector<44x256xbf16>
    %33 = tpu.concatenate %30, %31, %32 in 1 : vector<44x256xbf16>, vector<44x256xbf16>, vector<44x256xbf16> -> vector<44x768xbf16>
    %c0_9 = arith.constant 0 : index
    %c0_10 = arith.constant 0 : index
    %34 = vector.load %arg5[%c0_9, %c0_10] : memref<768x256xbf16, #tpu.memory_space<vmem>>, vector<768x256xbf16>
    %cst_11 = arith.constant dense<0.000000e+00> : vector<44x256xf32>
    %35 = tpu.matmul %33, %34, %cst_11 {dimension_numbers = #tpu.dot_dimension_numbers<[1], [0], [0], [1], [0, 0, 1, 1], [], []>} : vector<44x768xbf16>, vector<768x256xbf16>, vector<44x256xf32> -> vector<44x256xf32>
    %c0_12 = arith.constant 0 : index
    %c0_13 = arith.constant 0 : index
    %36 = vector.load %arg6[%c0_12, %c0_13] : memref<1x256xf32, #tpu.memory_space<vmem>>, vector<1x256xf32>
    %37 = vector.broadcast %36 : vector<1x256xf32> to vector<44x256xf32>
    %38 = arith.addf %35, %37 : vector<44x256xf32>
    %cst_14 = arith.constant 0.000000e+00 : f32
    %39 = vector.broadcast %cst_14 : f32 to vector<44x256xf32>
    %40 = arith.maximumf %38, %39 : vector<44x256xf32>
    %c0_15 = arith.constant 0 : index
    %c0_16 = arith.constant 0 : index
    %41 = vector.load %arg7[%c0_15, %c0_16] : memref<128x256xbf16, #tpu.memory_space<vmem>>, vector<128x256xbf16>
    %cst_17 = arith.constant dense<0.000000e+00> : vector<44x256xf32>
    %42 = tpu.matmul %2, %41, %cst_17 {dimension_numbers = #tpu.dot_dimension_numbers<[1], [0], [0], [1], [0, 0, 1, 1], [], []>} : vector<44x128xbf16>, vector<128x256xbf16>, vector<44x256xf32> -> vector<44x256xf32>
    %c0_18 = arith.constant 0 : index
    %c0_19 = arith.constant 0 : index
    %43 = vector.load %arg8[%c0_18, %c0_19] : memref<1x256xf32, #tpu.memory_space<vmem>>, vector<1x256xf32>
    %44 = vector.broadcast %43 : vector<1x256xf32> to vector<44x256xf32>
    %45 = arith.addf %42, %44 : vector<44x256xf32>
    %46 = tpu.iota {dimensions = array<i32: 0>} : vector<44x1xi32>
    %47 = vector.broadcast %0 : i32 to vector<44x1xi32>
    %48 = arith.addi %47, %46 : vector<44x1xi32>
    %c28_i32 = arith.constant 28 : i32
    %49 = vector.broadcast %c28_i32 : i32 to vector<44x1xi32>
    %50 = arith.cmpi slt, %48, %49 : vector<44x1xi32>
    %cst_20 = arith.constant 0.000000e+00 : f32
    %51 = vector.shape_cast %50 : vector<44x1xi1> to vector<44x1xi1>
    %52 = vector.broadcast %51 : vector<44x1xi1> to vector<44x256xi1>
    %53 = vector.broadcast %cst_20 : f32 to vector<44x256xf32>
    %54 = arith.select %52, %45, %53 : vector<44x256xi1>, vector<44x256xf32>
    %55 = arith.addf %40, %54 : vector<44x256xf32>
    %cst_21 = arith.constant 0.000000e+00 : f32
    %56 = vector.broadcast %cst_21 : f32 to vector<44x256xf32>
    %57 = arith.maximumf %55, %56 : vector<44x256xf32>
    %58 = arith.truncf %57 : vector<44x256xf32> to vector<44x256xbf16>
    %c0_22 = arith.constant 0 : index
    %c0_23 = arith.constant 0 : index
    %c0_24 = arith.constant 0 : index
    %59 = vector.load %arg9[%c0_22, %c0_23, %c0_24] : memref<1x44x256xbf16, #tpu.memory_space<vmem>>, vector<1x44x256xbf16>
    %60 = vector.shape_cast %59 : vector<1x44x256xbf16> to vector<44x256xbf16>
    %61 = vector.shape_cast %58 : vector<44x256xbf16> to vector<1x44x256xbf16>
    tpu.vector_store %arg9[%c0_22, %c0_23, %c0_24], %61 {strides = array<i32>} : memref<1x44x256xbf16, #tpu.memory_space<vmem>>, vector<1x44x256xbf16>,
    return
  }
  func.func @transform_0(%arg0: i32, %arg1: i32) -> (i32, i32, i32) {
    %c0_i32 = arith.constant 0 : i32
    %c0_i32_0 = arith.constant 0 : i32
    return %arg0, %arg1, %c0_i32 : i32, i32, i32
  }
  func.func @transform_1(%arg0: i32, %arg1: i32) -> (i32, i32) {
    %c0_i32 = arith.constant 0 : i32
    %c0_i32_0 = arith.constant 0 : i32
    %c0_i32_1 = arith.constant 0 : i32
    return %c0_i32, %c0_i32_0 : i32, i32
  }
  func.func @transform_2(%arg0: i32, %arg1: i32) -> (i32, i32) {
    %c0_i32 = arith.constant 0 : i32
    %c0_i32_0 = arith.constant 0 : i32
    %c0_i32_1 = arith.constant 0 : i32
    return %c0_i32, %c0_i32_0 : i32, i32
  }
  func.func @transform_3(%arg0: i32, %arg1: i32) -> (i32, i32) {
    %c0_i32 = arith.constant 0 : i32
    %c0_i32_0 = arith.constant 0 : i32
    %c0_i32_1 = arith.constant 0 : i32
    return %c0_i32, %c0_i32_0 : i32, i32
  }
  func.func @transform_4(%arg0: i32, %arg1: i32) -> (i32, i32) {
    %c0_i32 = arith.constant 0 : i32
    %c0_i32_0 = arith.constant 0 : i32
    %c0_i32_1 = arith.constant 0 : i32
    return %c0_i32, %c0_i32_0 : i32, i32
  }
  func.func @transform_5(%arg0: i32, %arg1: i32) -> (i32, i32) {
    %c0_i32 = arith.constant 0 : i32
    %c0_i32_0 = arith.constant 0 : i32
    %c0_i32_1 = arith.constant 0 : i32
    return %c0_i32, %c0_i32_0 : i32, i32
  }
  func.func @transform_6(%arg0: i32, %arg1: i32) -> (i32, i32) {
    %c0_i32 = arith.constant 0 : i32
    %c0_i32_0 = arith.constant 0 : i32
    %c0_i32_1 = arith.constant 0 : i32
    return %c0_i32, %c0_i32_0 : i32, i32
  }
  func.func @transform_7(%arg0: i32, %arg1: i32) -> (i32, i32, i32) {
    %c0_i32 = arith.constant 0 : i32
    %c0_i32_0 = arith.constant 0 : i32
    return %arg0, %arg1, %c0_i32 : i32, i32, i32
  }
}

</mosaic_0001>

<bundles_post_ra>
// kernel: _lambda_.3
= control target key start
LH: loop header
LB: loop body
LE: loop exit
PB: predicated region body
PF: predicated region fallthrough
CT: control target
= control target key end

     0   :  { %12 = vsyncpa [#allocation3], 0  ;;  %s1402_s24 = smov 0   ;;  %s1404_s25 = smov 0   ;;  %s1532_s0 = inlined_call_operand.vmem [shape: bf16[2,20,4], index: 0, kind: input, shape index: {}]   ;;  %s1533_s1 = inlined_call_operand.vmem [shape: bf16[12,64], index: 1, kind: input, shape index: {}]   ;;  %s1534_s2 = inlined_call_operand.vmem [shape: f32[1,64], index: 2, kind: input, shape index: {}]   ;;  %s1535_s3 = inlined_call_operand.hbm [shape: bf16[192,64], index: 3, kind: input, shape index: {}]   ;;  %s1536_s4 = inlined_call_operand.vmem [shape: f32[1,64], index: 4, kind: input, shape index: {}]   ;;  %s1537_s5 = inlined_call_operand.vmem [shape: bf16[4,64], index: 5, kind: input, shape index: {}]   ;;  %s1538_s6 = inlined_call_operand.vmem [shape: f32[1,64], index: 6, kind: input, shape index: {}]   ;;  %s1539_s7 = inlined_call_operand.vmem [shape: bf16[2,20,64], index: 7, kind: output, shape index: {}]  }
   0x1   :  { %s1406_s26 = smov 0  }
   0x2 LB: > { %s1107_s27 = sadd.s32 4294967295, %s1356_s26   ;;  %s30_s28 = sadd.s32 1, %s1352_s25  ;;  %s1356_s26 = sphi %s1406_s26, %s18_s26   ;;  %s1352_s25 = sphi %s1404_s25, %s1543_s25   ;;  %s1348_s24 = sphi %s1402_s24, %s1542_s24  }
   0x3   : > { %p32_p0 = scmp.ge.s32.totalorder %s30_s28, 2  ;;  %p1109_p1 = scmp.ge.s32.totalorder %s1356_s26, 1 }
   0x4   : > { %p217_p2 = scmp.lt.s32.totalorder %s1356_s26, 3  ;;  %p1427_p4 = scmp.eq.s32.totalorder %s1107_s27, 0 }
   0x5   : > { %s1545_s28 = smov (%p32_p0, %s30_s28), 0  ;;  %s1358_s8 = smov [#allocation2]  }
   0x6   : > { %p1423_p3 = pnand %p1109_p1, %p217_p2  ;;  %s235_s9 = sshll.u32 %s1358_s8, 4  ;;  %s236_s9 = int_to_ptr.vmem [resolvable:$true] %s235_s9 }
   0x7   : > { %s1315_s10 = scalar_lea.vmem %s236_s9, 1536  ;;  %p1323_p11 = scmp.lt.s32.totalorder %s236_s9, %s236_s9 }
   0x8   : > { %p1255_p5 = pneg %p1423_p3  ;;  %p1316_p8 = scmp.ne.s32.totalorder %s236_s9, %s1315_s10 }
   0x9   : > { %p1324_p12 = scmp.lt.s32.totalorder %s1315_s10, %s1315_s10 }
   0xa   : > { %p1256_p6 = pnand %p1427_p4, %p1255_p5 }
   0xb   : > { %p1325_p13 = por %p1324_p12, %p1323_p11 }
   0xc   : > { %p1306_p7 = pneg %p1256_p6 }
   0xe   : > { %p1318_p9 = pnand %p1316_p8, %p1306_p7 }
  0x10   : > { %p1319_p10 = pneg %p1318_p9 }
  0x12   : > { %p1326_p0 = pnand %p1325_p13, %p1319_p10 }
  0x14   : > { %1329 = shalt.err (!%p1326_p0)
}
  0x15   : > { %s1359_s11 = smov 64   ;;  %s1360_s12 = smov 4  }
  0x16   : > { %1258 = dma.hbm_to_vmem [thread:$0]  (!%p1256_p6), %s1535_s3, 1536, %s236_s9, [#allocation3], %s1359_s11, %s1359_s11, %s1360_s12  }
  0x17   : > { %273 = sbr.rel (%p1423_p3) target bundleno = 495 (0x1ef), region = 48 }
  0x1c   : > { %1343 = dma.done.wait (%p1427_p4), [#allocation3], 1536  }
  0x1d   : > { %1345 = vsyncadd (%p1427_p4), [#allocation3], 4294965760  ;;  %p314_p1 = scmp.lt.s32.totalorder %s1348_s24, 1  ;;  %vm386_vm0 = vcmask 1041408   ;;  %v1361_v0 = vmov 0   ;;  %vm379_vm2 = vcmask 31744   ;;  %v582_v44 = vlaneseq }
  0x1e   : > { %v352_v1 = vrot.slane %v1361_v0, 6  ;;  %v355_v2 = vrot.slane %v1361_v0, 7  ;;  %vm348_vm1 = vsmask.f32 1280  ;;  %v346_v3 = vld [vmem:[%s1533_s1] sm:$0xf] }
  0x1f   : > { %s1547_s24 = smov (!%p314_p1, %s1348_s24), 1  ;;  %v1118_v4 = vcombine.low %v346_v3, %v346_v3  ;;  %1247 = vmatprep.subr.msk.bf16.mxu1 %vm386_vm0, %v346_v3  ;;  %v452_v5 = vsel %vm386_vm0, %v346_v3, 0  ;;  %v347_v8 = vld [vmem:[%s1533_s1 + $0x4] sm:$0x3]  ;;  %vm502_vm3 = vcmask 1040384   ;;  %v1292_v33 = vld [vmem:[#allocation2 + $0x18] sm:$0xff]  }
  0x20   : > { %s1250_s15 = smul.u32 12, %s1547_s24  ;;  %1193 = vmatpush3.bf16.msra.mxu1 %v452_v5  ;;  %v356_v7 = vor.u32 %v355_v2, %v352_v1  ;;  %v515_v26 = vsel %vm386_vm0, %v347_v8, 0  ;;  %v1293_v34 = vld [vmem:[#allocation2 + $0x10] sm:$0xff]   ;;  %v1294_v35 = vld [vmem:[#allocation2 + $0x38] sm:$0xff]   ;;  %v1295_v36 = vld [vmem:[#allocation2 + $0x8] sm:$0xff]   ;;  %v583_v48 = vshrl.u32 %v582_v44, 7 }
  0x21   : > { %v378_v10 = vrot.slane %v1118_v4, 2  ;;  %1204 = vmatprep.subr.bf16.mxu1 %v1294_v35  ;;  %v1296_v37 = vld [vmem:[#allocation2 + $0x30] sm:$0xff]   ;;  %v1297_v38 = vld [vmem:[#allocation2] sm:$0xff]   ;;  %v1298_v39 = vld [vmem:[#allocation2 + $0x28] sm:$0xff]   ;;  %vm674_vm6 = vcmask 523264   ;;  %vm807_vm8 = vcmask 1046528  }
  0x22   : > { %s321_s18 = scalar_lea.vmem %s1532_s0, %s1250_s15  ;;  %v1299_v40 = vld [vmem:[#allocation2 + $0x20] sm:$0xff]   ;;  %v1490_v41 = vld [vmem:[#allocation2 + $0x58] sm:$0xff]   ;;  %v585_v51 = vadd.s32 16, %v583_v48  ;;  %v587_v3 = vadd.s32 4294967294, %v583_v48  ;;  %vm634_vm7 = vsmask.f32 7424  ;;  %s331_s14 = scalar_lea.vmem %s1539_s7, %s1250_s15 }
  0x23   : > { %v1459_v6 = vld [vmem:[%s321_s18] sm:$0xff]   ;;  %v1464_v9 = vld [vmem:[%s321_s18 + $0x8] ss:$0 sps:$4 sm:$0x33]   ;;  %1246 = vmatprep.subr.msk.bf16.mxu0 %vm386_vm0, %v378_v10  ;;  %v388_v18 = vsel %vm386_vm0, %v378_v10, 0  ;;  %vm1006_vm9 = vcmask 517120  }
  0x24   : > { %v358_v11 = vshrl.u32 %v1459_v6, 16  ;;  %v361_v12 = vshll.u32 %v1459_v6, 16  ;;  %v441_v13 = vrot.slane %v1459_v6, 6  ;;  %v367_v14 = vshrl.u32 %v1464_v9, 16  ;;  %1187 = vmatpush3.bf16.msra.mxu0 %v388_v18  ;;  %v905_v42 = vld [vmem:[%s1537_s5] sm:$0x3] }
  0x25   : > { %v370_v15 = vshll.u32 %v1464_v9, 16  ;;  %v443_v16 = vrot.slane %v1464_v9, 6  ;;  %v504_v17 = vrot.slane %v1459_v6, 7  ;;  %1248 = vmatprep.subr.msk.bf16.mxu0 %vm386_vm0, %v347_v8  ;;  %v506_v27 = vrot.slane %v1464_v9, 7  ;;  %v1125_v55 = vld [vmem:[%s1534_s2] ss:$0 sm:$0xff] }
  0x26   : > { %v360_v19 = vrot.slane %v358_v11, 6  ;;  %v363_v20 = vrot.slane %v361_v12, 7  ;;  %v442_v21 = vsel %vm386_vm0, %v352_v1, %v441_v13  ;;  %v369_v22 = vrot.slane %v367_v14, 6  ;;  %v1145_v48 = vld [vmem:[%s1538_s6] ss:$0 sm:$0xff] }
  0x27   : > { %1194 = vmatprep.mubr.msk.bf16.mxu1 %vm379_vm2, %v442_v21  ;;  %v372_v23 = vrot.slane %v370_v15, 7  ;;  %v444_v24 = vsel %vm386_vm0, %v441_v13, %v443_v16  ;;  %v505_v30 = vsel %vm502_vm3, %v355_v2, %v504_v17  ;;  %v507_v32 = vsel %vm502_vm3, %v504_v17, %v506_v27  ;;  %v1301_v27 = vld [vmem:[#allocation2 + $0x50] sm:$0xff]  }
  0x28   : > { %v364_v25 = vor.u32 %v363_v20, %v360_v19  ;;  %1195 = vmatmul.mubr.msk.bf16.vlgmr.msra.gmra.mxu1 %vm379_vm2, %v444_v24  ;;  %v589_v56 = vadd.s32 4294967294, %v585_v51  ;;  %vm590_vm5 = vcmp.ge.s32.totalorder %v587_v3, 0  ;;  %v918_v16 = vsel %vm386_vm0, %v905_v42, 0 }
  0x29   : > { %v373_v28 = vor.u32 %v372_v23, %v369_v22  ;;  %1205 = vmatpush3.bf16.msra.mxu1 %v1294_v35  ;;  %vm1003_vm10 = vcmask 519168  }
  0x2a   : > { %v365_v29 = vsel %vm348_vm1, %v356_v7, %v364_v25  ;;  %1206 = vmatprep.subr.bf16.mxu1 %v1296_v37  ;;  %vm595_vm4 = vcmp.lt.s32.totalorder %v589_v56, 18 }
  0x2b   : > { %1188 = vmatprep.mubr.msk.bf16.mxu0 %vm379_vm2, %v365_v29  ;;  %v374_v31 = vsel %vm348_vm1, %v364_v25, %v373_v28  ;;  %v1303_v29 = vld [vmem:[#allocation2 + $0x40] sm:$0xff]  }
  0x2c   : > { %1189 = vmatmul.mubr.msk.bf16.vlgmr.msra.gmra.mxu0 %vm379_vm2, %v374_v31 }
  0x2d   : > { %1199 = vmatpush3.bf16.msra.mxu0 %v515_v26  ;;  %1200 = vmatprep.mubr.msk.bf16.mxu0 %vm379_vm2, %v505_v30 }
  0x2e   : > { %1216 = vmatprep.subr.bf16.mxu0 %v1292_v33  ;;  %1207 = vmatpush3.bf16.msra.mxu1 %v1296_v37 }
  0x2f   : > { %1208 = vmatprep.subr.bf16.mxu1 %v1298_v39 }
  0x32   : > { %1209 = vmatpush3.bf16.msra.mxu1 %v1298_v39 }
  0x33   : > { %1210 = vmatprep.subr.bf16.mxu1 %v1299_v40 }
  0x34   : > { %1201 = vmatmul.mubr.msk.bf16.vlgmr.msra.gmra.mxu0 %vm379_vm2, %v507_v32 }
  0x35   : > { %1217 = vmatpush3.bf16.msra.mxu0 %v1292_v33 }
  0x36   : > { %1218 = vmatprep.subr.bf16.mxu0 %v1293_v34  ;;  %1211 = vmatpush3.bf16.msra.mxu1 %v1299_v40 }
  0x37   : > { %1228 = vmatprep.subr.bf16.mxu1 %v1490_v41 }
  0x39   : > { %1219 = vmatpush3.bf16.msra.mxu0 %v1293_v34 }
  0x3a   : > { %1220 = vmatprep.subr.bf16.mxu0 %v1295_v36 }
  0x3d   : > { %1221 = vmatpush3.bf16.msra.mxu0 %v1295_v36 }
  0x3e   : > { %1222 = vmatprep.subr.bf16.mxu0 %v1297_v38 }
  0x41   : > { %1223 = vmatpush3.bf16.msra.mxu0 %v1297_v38 }
  0x42   : > { %1249 = vmatprep.subr.msk.bf16.mxu0 %vm386_vm0, %v905_v42  ;;  %v1144_v42 = vld [vmem:[%s1536_s4] ss:$0 sm:$0xff] }
  0xe8   : > { %v1196_v43 = vpop.f32.mrf.mxu1 }
  0xea   : > { %v488_v45 = vpop.f32.mrf.mxu1 }
  0xec   : > { %v1190_v46 = vpop.f32.mrf.mxu0  ;;  %v1197_v47 = vpop.f32.mrf.mxu1 }
  0xed   : > { %v497_v53 = vadd.f32 %v1196_v43, %v1190_v46 }
  0xee   : > { %v424_v49 = vpop.f32.mrf.mxu0  ;;  %v491_v59 = vpop.f32.mrf.mxu1 }
  0xef   : > { %v489_v57 = vadd.f32 %v488_v45, %v424_v49 }
  0xf0   : > { %v1191_v50 = vpop.f32.mrf.mxu0 }
  0xf2   : > { %v427_v52 = vpop.f32.mrf.mxu0 }
  0xf3   : > { %v492_v0 = vadd.f32 %v491_v59, %v427_v52 }
  0xf4   : > { %v1202_v54 = vpop.f32.mrf.mxu0 }
  0xf5   : > { %v567_v58 = vadd.f32 %v1202_v54, %v497_v53 }
  0xf6   : > { %v551_v60 = vpop.f32.mrf.mxu0 }
  0xf7   : > { %v577_v61 = vadd.f32 %v1125_v55, %v567_v58  ;;  %v565_v62 = vadd.f32 %v551_v60, %v489_v57 }
  0xf8   : > { %v1203_v63 = vpop.f32.mrf.mxu0 }
  0xf9   : > { %v580_v1 = vmax.f32 %v577_v61, 0.0  ;;  %v575_v2 = vadd.f32 %v1125_v55, %v565_v62 }
  0xfa   : > { %v554_v4 = vpop.f32.mrf.mxu0 }
  0xfb   : > { %v607_v5 = vsel %vm595_vm4, %v580_v1, 0.0  ;;  %v566_v7 = vadd.f32 %v554_v4, %v492_v0  ;;  %v578_v8 = vmax.f32 %v575_v2, 0.0 }
  0xfc   : > { %v609_v10 = vpack.c.bf16 %v607_v5, %v607_v5 }
  0xfd   : > { %v576_v11 = vadd.f32 %v1125_v55, %v566_v7  ;;  %v605_v13 = vsel %vm590_vm5, %v578_v8, 0.0 }
  0xfe   : > { %v643_v15 = vshll.u32 %v609_v10, 16  ;;  %v647_v22 = vshrl.u32 %v609_v10, 16  ;;  %v809_v26 = vrot.slane %v609_v10, 1 }
  0xff   : > { %v579_v12 = vmax.f32 %v576_v11, 0.0 }
 0x100   : > { %v645_v20 = vrot.slane %v643_v15, 1 }
 0x101   : > { %v608_v14 = vpack.c.bf16 %v579_v12, %v605_v13 }
 0x102   : > { %v649_v25 = vor.u32 %v647_v22, %v645_v20 }
 0x103   : > { %1224 = vmatprep.mubr.msk.bf16.mxu0 %vm674_vm6, %v608_v14  ;;  %v638_v17 = vshll.u32 %v608_v14, 16  ;;  %v636_v18 = vshrl.u32 %v608_v14, 16  ;;  %v808_v23 = vrot.slane %v608_v14, 1 }
 0x104   : > { %1225 = vmatmul.mubr.msk.bf16.vlgmr.msra.gmra.mxu0 %vm674_vm6, %v609_v10 }
 0x105   : > { %v640_v19 = vrot.slane %v638_v17, 1  ;;  %1241 = vmatpush3.bf16.msra.mxu0 %v918_v16  ;;  %1242 = vmatprep.mubr.msk.bf16.mxu0 %vm379_vm2, %v1459_v6  ;;  %v810_v28 = vsel %vm807_vm8, %v808_v23, %v809_v26  ;;  %v1302_v6 = vld [vmem:[#allocation2 + $0x48] sm:$0xff]  }
 0x107   : > { %v641_v21 = vor.u32 %v640_v19, %v636_v18 }
 0x109   : > { %v646_v24 = vsel %vm634_vm7, %v641_v21, %v645_v20 }
 0x10a   : > { %1212 = vmatprep.mubr.msk.bf16.mxu1 %vm674_vm6, %v646_v24 }
 0x10b   : > { %1213 = vmatmul.mubr.msk.bf16.vlgmr.msra.gmra.mxu1 %vm674_vm6, %v649_v25 }
 0x10c   : > { %1229 = vmatpush3.bf16.msra.mxu1 %v1490_v41  ;;  %1236 = vmatprep.mubr.msk.bf16.mxu1 %vm674_vm6, %v810_v28 }
 0x10d   : > { %1230 = vmatprep.subr.bf16.mxu1 %v1301_v27  ;;  %1243 = vmatmul.mubr.msk.bf16.vlgmr.msra.gmra.mxu0 %vm379_vm2, %v1464_v9 }
 0x110   : > { %1231 = vmatpush3.bf16.msra.mxu1 %v1301_v27 }
 0x111   : > { %1232 = vmatprep.subr.bf16.mxu1 %v1302_v6 }
 0x114   : > { %1233 = vmatpush3.bf16.msra.mxu1 %v1302_v6 }
 0x115   : > { %1234 = vmatprep.subr.bf16.mxu1 %v1303_v29 }
 0x118   : > { %1235 = vmatpush3.bf16.msra.mxu1 %v1303_v29 }
 0x11b   : > { %1237 = vmatmul.mubr.msk.bf16.vlgmr.msra.gmra.mxu1 %vm674_vm6, %v809_v26 }
 0x1c4   : > { %v1226_v30 = vpop.f32.mrf.mxu0 }
 0x1c6   : > { %v791_v31 = vpop.f32.mrf.mxu0 }
 0x1c8   : > { %v1227_v32 = vpop.f32.mrf.mxu0 }
 0x1ca   : > { %v794_v33 = vpop.f32.mrf.mxu0 }
 0x1cb   : > { %v1214_v34 = vpop.f32.mrf.mxu1 }
 0x1cc   : > { %v800_v9 = vadd.f32 %v1226_v30, %v1214_v34 }
 0x1cd   : > { %v715_v35 = vpop.f32.mrf.mxu1  ;;  %v1244_v36 = vpop.f32.mrf.mxu0 }
 0x1ce   : > { %v792_v43 = vadd.f32 %v791_v31, %v715_v35 }
 0x1cf   : > { %v1215_v37 = vpop.f32.mrf.mxu1  ;;  %v954_v38 = vpop.f32.mrf.mxu0 }
 0x1d0   : > { %v955_v55 = vadd.f32 %v1145_v48, %v954_v38 }
 0x1d1   : > { %v1245_v39 = vpop.f32.mrf.mxu0  ;;  %v718_v40 = vpop.f32.mrf.mxu1 }
 0x1d2   : > { %v795_v50 = vadd.f32 %v794_v33, %v718_v40 }
 0x1d3   : > { %v957_v58 = vpop.f32.mrf.mxu0 }
 0x1d4   : > { %v958_v63 = vadd.f32 %v1145_v48, %v957_v58 }
 0x1db   : > { %v1238_v41 = vpop.f32.mrf.mxu1 }
 0x1dc   : > { %v891_v44 = vadd.f32 %v1238_v41, %v800_v9 }
 0x1dd   : > { %v875_v45 = vpop.f32.mrf.mxu1 }
 0x1de   : > { %v901_v46 = vadd.f32 %v1144_v42, %v891_v44  ;;  %v889_v47 = vadd.f32 %v875_v45, %v792_v43 }
 0x1df   : > { %v1239_v49 = vpop.f32.mrf.mxu1 }
 0x1e0   : > { %v904_v51 = vmax.f32 %v901_v46, 0.0  ;;  %v899_v52 = vadd.f32 %v1144_v42, %v889_v47 }
 0x1e1   : > { %v878_v53 = vpop.f32.mrf.mxu1 }
 0x1e2   : > { %v989_v54 = vmax.f32 %v904_v51, 0.0  ;;  %v902_v56 = vmax.f32 %v899_v52, 0.0  ;;  %v890_v57 = vadd.f32 %v878_v53, %v795_v50 }
 0x1e4   : > { %v1155_v59 = vpack.c.bf16 %v989_v54, %v989_v54  ;;  %v984_v60 = vadd.f32 %v955_v55, %v902_v56  ;;  %v900_v61 = vadd.f32 %v1144_v42, %v890_v57 }
 0x1e6   : > { %1007 = vst.msk [vmem:[%s331_s14 + $0x8] sm:$0x3] %vm1006_vm9, %v1155_v59  ;;  %v987_v62 = vmax.f32 %v984_v60, 0.0  ;;  %v903_v0 = vmax.f32 %v900_v61, 0.0 }
 0x1e8   : > { %v1153_v1 = vpack.c.bf16 %v987_v62, %v987_v62  ;;  %v985_v2 = vadd.f32 %v958_v63, %v903_v0 }
 0x1ea   : > { %1004 = vst.msk [vmem:[%s331_s14] sm:$0xf] %vm1003_vm10, %v1153_v1  ;;  %v988_v3 = vmax.f32 %v985_v2, 0.0 }
 0x1ec   : > { %v1154_v4 = vpack.c.bf16 %v988_v3, %v988_v3 }
 0x1ee   : > { %1005 = vst.msk [vmem:[%s331_s14 + $0x4] sm:$0xf] %vm1003_vm10, %v1154_v4 }
 0x1ef PF: > { %s18_s26 = sadd.s32 1, %s1356_s26   ;;  %s1542_s24 = smov %s1352_s25 }
 0x1f0   : > { %p15_p2 = scmp.ge.s32.totalorder %s18_s26, 4   ;;  %s1543_s25 = smov %s1545_s28 }
 0x1f2   :  { %17 = sbr.rel (!%p15_p2) target bundleno = 2 (0x2), region = 83 }
 0x1f7   :  { %1038 = vsyncpa [#allocation3], 1 }
 0x1f8   :  { %1040 = vsyncpa [#allocation3 + $0x1], 1 }

// kernel: _lambda_.4
= control target key start
LH: loop header
LB: loop body
LE: loop exit
PB: predicated region body
PF: predicated region fallthrough
CT: control target
= control target key end

     0   :  { %12 = vsyncpa [#allocation3], 0  ;;  %s1640_s24 = smov 0   ;;  %s1642_s25 = smov 0   ;;  %s1836_s0 = inlined_call_operand.vmem [shape: bf16[2,28,64], index: 0, kind: input, shape index: {}]   ;;  %s1837_s1 = inlined_call_operand.hbm [shape: bf16[192,128], index: 1, kind: input, shape index: {}]   ;;  %s1838_s2 = inlined_call_operand.vmem [shape: f32[1,128], index: 2, kind: input, shape index: {}]   ;;  %s1839_s3 = inlined_call_operand.vmem [shape: bf16[384,128], index: 3, kind: input, shape index: {}]   ;;  %s1840_s4 = inlined_call_operand.vmem [shape: f32[1,128], index: 4, kind: input, shape index: {}]   ;;  %s1841_s5 = inlined_call_operand.vmem [shape: bf16[64,128], index: 5, kind: input, shape index: {}]   ;;  %s1842_s6 = inlined_call_operand.vmem [shape: f32[1,128], index: 6, kind: input, shape index: {}]   ;;  %s1843_s7 = inlined_call_operand.vmem [shape: bf16[2,28,128], index: 7, kind: output, shape index: {}]  }
   0x1   :  { %s1644_s26 = smov 0  }
   0x2 LB: > { %s1243_s27 = sadd.s32 4294967295, %s1593_s26   ;;  %s30_s28 = sadd.s32 1, %s1589_s25  ;;  %s1593_s26 = sphi %s1644_s26, %s18_s26   ;;  %s1589_s25 = sphi %s1642_s25, %s1847_s25   ;;  %s1585_s24 = sphi %s1640_s24, %s1846_s24  }
   0x3   : > { %p32_p0 = scmp.ge.s32.totalorder %s30_s28, 2  ;;  %p1245_p1 = scmp.ge.s32.totalorder %s1593_s26, 1 }
   0x4   : > { %p217_p2 = scmp.lt.s32.totalorder %s1593_s26, 3  ;;  %p1665_p4 = scmp.eq.s32.totalorder %s1243_s27, 0 }
   0x5   : > { %s1849_s28 = smov (%p32_p0, %s30_s28), 0  ;;  %s1595_s8 = smov [#allocation2]  }
   0x6   : > { %p1661_p3 = pnand %p1245_p1, %p217_p2  ;;  %s229_s9 = sshll.u32 %s1595_s8, 4  ;;  %s230_s9 = int_to_ptr.vmem [resolvable:$true] %s229_s9 }
   0x7   : > { %s1552_s10 = scalar_lea.vmem %s230_s9, 1536  ;;  %p1560_p11 = scmp.lt.s32.totalorder %s230_s9, %s230_s9 }
   0x8   : > { %p1464_p5 = pneg %p1661_p3  ;;  %p1553_p8 = scmp.ne.s32.totalorder %s230_s9, %s1552_s10 }
   0x9   : > { %p1561_p12 = scmp.lt.s32.totalorder %s1552_s10, %s1552_s10 }
   0xa   : > { %p1465_p6 = pnand %p1665_p4, %p1464_p5 }
   0xb   : > { %p1562_p13 = por %p1561_p12, %p1560_p11 }
   0xc   : > { %p1543_p7 = pneg %p1465_p6 }
   0xe   : > { %p1555_p9 = pnand %p1553_p8, %p1543_p7 }
  0x10   : > { %p1556_p10 = pneg %p1555_p9 }
  0x12   : > { %p1563_p0 = pnand %p1562_p13, %p1556_p10 }
  0x14   : > { %1566 = shalt.err (!%p1563_p0)
}
  0x15   : > { %s1596_s11 = smov 64   ;;  %s1597_s12 = smov 4  }
  0x16   : > { %1467 = dma.hbm_to_vmem [thread:$0]  (!%p1465_p6), %s1837_s1, 1536, %s230_s9, [#allocation3], %s1596_s11, %s1596_s11, %s1597_s12  }
  0x17   : > { %273 = sbr.rel (%p1661_p3) target bundleno = 497 (0x1f1), region = 48 }
  0x1c   : > { %1580 = dma.done.wait (%p1665_p4), [#allocation3], 1536  }
  0x1d   : > { %1582 = vsyncadd (%p1665_p4), [#allocation3], 4294965760  ;;  %p314_p1 = scmp.lt.s32.totalorder %s1585_s24, 1  ;;  %v1499_v0 = vld [vmem:[#allocation2 + $0x38] sm:$0xff]   ;;  %v1501_v2 = vld [vmem:[#allocation2 + $0x30] sm:$0xff]   ;;  %vm374_vm0 = vcmask 1042432   ;;  %v650_v58 = vlaneseq }
  0x1e   : > { %v1500_v1 = vld [vmem:[#allocation2 + $0x18] sm:$0xff]   ;;  %1392 = vmatprep.subr.bf16.mxu0 %v1499_v0  ;;  %v1502_v3 = vld [vmem:[#allocation2 + $0x10] sm:$0xff]   ;;  %v1503_v4 = vld [vmem:[#allocation2 + $0x28] sm:$0xff]   ;;  %vm404_vm1 = vcmask 523264   ;;  %v1598_v7 = vmov 0   ;;  %vm460_vm2 = vcmask 1043456  }
  0x1f   : > { %s1851_s24 = smov (!%p314_p1, %s1585_s24), 1  ;;  %1404 = vmatprep.subr.bf16.mxu1 %v1500_v1  ;;  %1393 = vmatpush3.bf16.msra.mxu0 %v1499_v0  ;;  %v1504_v5 = vld [vmem:[#allocation2 + $0x8] sm:$0xff]   ;;  %v1505_v6 = vld [vmem:[#allocation2 + $0x20] sm:$0xff]   ;;  %v375_v8 = vrot.slane %v1598_v7, 5  ;;  %v461_v11 = vrot.slane %v1598_v7, 4  ;;  %v1509_v17 = vld [vmem:[#allocation2 + $0x58] sm:$0xff]  }
  0x20   : > { %s1319_s15 = sshll.u32 %s1851_s24, 4  ;;  %1405 = vmatpush3.bf16.msra.mxu1 %v1500_v1  ;;  %1394 = vmatprep.subr.bf16.mxu0 %v1501_v2  ;;  %v1506_v9 = vld [vmem:[#allocation2] sm:$0xff]   ;;  %vm545_vm3 = vcmask 1041408   ;;  %v546_v20 = vrot.slane %v1598_v7, 6  ;;  %v1510_v22 = vld [vmem:[#allocation2 + $0x50] sm:$0xff]   ;;  %v1511_v27 = vld [vmem:[#allocation2 + $0x48] sm:$0xff]  }
  0x21   : > { %1406 = vmatprep.subr.bf16.mxu1 %v1502_v3  ;;  %s321_s18 = scalar_lea.vmem %s1836_s0, %s1319_s15  ;;  %v1512_v28 = vld [vmem:[#allocation2 + $0x40] sm:$0xff]   ;;  %v1513_v30 = vld [vmem:[%s1839_s3 + $0x78] sm:$0xff]   ;;  %v1516_v33 = vld [vmem:[%s1839_s3 + $0x70] sm:$0xff]   ;;  %v1789_v61 = vshrl.u32 %v650_v58, 7  ;;  %vm688_vm6 = vcmask 1046528   ;;  %vm694_vm7 = vcmask 1045504   ;;  %s331_s10 = scalar_lea.vmem %s1843_s7, %s1319_s15 }
  0x22   : > { %v1692_v10 = vld [vmem:[%s321_s18] sm:$0xff]   ;;  %v1694_v12 = vld [vmem:[%s321_s18 + $0x8] sm:$0x3f]   ;;  %v1515_v31 = vld [vmem:[%s1839_s3 + $0xb8] sm:$0xff]   ;;  %vm1599_vm8 = vmmov 1  }
  0x23   : > { %1395 = vmatpush3.bf16.msra.mxu0 %v1501_v2  ;;  %v376_v13 = vrot.slane %v1692_v10, 5  ;;  %v462_v14 = vrot.slane %v1692_v10, 4  ;;  %v378_v15 = vrot.slane %v1694_v12, 5  ;;  %v464_v16 = vrot.slane %v1694_v12, 4  ;;  %v1514_v32 = vld [vmem:[%s1839_s3 + $0x38] sm:$0xff]   ;;  %v1518_v34 = vld [vmem:[%s1839_s3 + $0xb0] sm:$0xff]  }
  0x24   : > { %1407 = vmatpush3.bf16.msra.mxu1 %v1502_v3  ;;  %1396 = vmatprep.subr.bf16.mxu0 %v1503_v4  ;;  %v547_v21 = vrot.slane %v1692_v10, 6  ;;  %v549_v23 = vrot.slane %v1694_v12, 6  ;;  %v1517_v35 = vld [vmem:[%s1839_s3 + $0x30] sm:$0xff]   ;;  %v1519_v36 = vld [vmem:[%s1839_s3 + $0x68] sm:$0xff]   ;;  %v1522_v39 = vld [vmem:[%s1839_s3 + $0x60] sm:$0xff]   ;;  %v654_v2 = vadd.s32 24, %v1789_v61 }
  0x25   : > { %1408 = vmatprep.subr.bf16.mxu1 %v1504_v5  ;;  %v377_v18 = vsel %vm374_vm0, %v375_v8, %v376_v13  ;;  %v463_v19 = vsel %vm460_vm2, %v461_v11, %v462_v14  ;;  %v379_v24 = vsel %vm374_vm0, %v376_v13, %v378_v15  ;;  %v465_v25 = vsel %vm460_vm2, %v462_v14, %v464_v16  ;;  %v1521_v37 = vld [vmem:[%s1839_s3 + $0xa8] sm:$0xff]   ;;  %v1524_v40 = vld [vmem:[%s1839_s3 + $0xa0] sm:$0xff]   ;;  %v1525_v42 = vld [vmem:[%s1839_s3 + $0x58] sm:$0xff]  }
  0x26   : > { %1400 = vmatprep.mubr.msk.bf16.mxu0 %vm404_vm1, %v377_v18  ;;  %1412 = vmatprep.mubr.msk.bf16.mxu1 %vm404_vm1, %v463_v19  ;;  %v548_v26 = vsel %vm545_vm3, %v546_v20, %v547_v21  ;;  %v550_v29 = vsel %vm545_vm3, %v547_v21, %v549_v23  ;;  %v1520_v38 = vld [vmem:[%s1839_s3 + $0x28] sm:$0xff]   ;;  %v1523_v41 = vld [vmem:[%s1839_s3 + $0x20] sm:$0xff]   ;;  %v1527_v43 = vld [vmem:[%s1839_s3 + $0x98] sm:$0xff]   ;;  %v659_v13 = vadd.s32 4294967292, %v654_v2  ;;  %v656_v16 = vadd.s32 4294967292, %v1789_v61 }
  0x27   : > { %1397 = vmatpush3.bf16.msra.mxu0 %v1503_v4  ;;  %v1526_v44 = vld [vmem:[%s1839_s3 + $0x18] sm:$0xff]   ;;  %v1528_v45 = vld [vmem:[%s1839_s3 + $0x50] sm:$0xff]   ;;  %v1531_v48 = vld [vmem:[%s1839_s3 + $0x48] sm:$0xff]  }
  0x28   : > { %1409 = vmatpush3.bf16.msra.mxu1 %v1504_v5  ;;  %1398 = vmatprep.subr.bf16.mxu0 %v1505_v6  ;;  %v1530_v46 = vld [vmem:[%s1839_s3 + $0x90] sm:$0xff]   ;;  %v1533_v49 = vld [vmem:[%s1839_s3 + $0x88] sm:$0xff]   ;;  %v1534_v51 = vld [vmem:[%s1839_s3 + $0x40] sm:$0xff]   ;;  %vm667_vm4 = vcmp.lt.s32.totalorder %v659_v13, 24  ;;  %vm660_vm5 = vcmp.ge.s32.totalorder %v656_v16, 0 }
  0x29   : > { %1410 = vmatprep.subr.bf16.mxu1 %v1506_v9  ;;  %v1529_v47 = vld [vmem:[%s1839_s3 + $0x10] sm:$0xff]   ;;  %v1532_v50 = vld [vmem:[%s1839_s3 + $0x8] sm:$0xff]   ;;  %v1535_v52 = vld [vmem:[%s1839_s3] sm:$0xff]  }
  0x2a   : > { %v1536_v53 = vld [vmem:[%s1839_s3 + $0x80] sm:$0xff]   ;;  %v1537_v54 = vld [vmem:[%s1841_s5 + $0x18] sm:$0xff]   ;;  %vm1300_vm9 = vmpackc.low %vm1599_vm8, %vm660_vm5 }
  0x2b   : > { %1399 = vmatpush3.bf16.msra.mxu0 %v1505_v6  ;;  %v1274_v8 = vld [vmem:[%s1838_s2] ss:$0 sm:$0xff]  ;;  %vm1303_vm10 = vmpackc.low %vm667_vm4, %vm1599_vm8 }
  0x2c   : > { %1411 = vmatpush3.bf16.msra.mxu1 %v1506_v9  ;;  %1416 = vmatprep.subr.bf16.mxu0 %v1509_v17  ;;  %v1306_v58 = vld [vmem:[%s1842_s6] ss:$0 sm:$0xff] }
  0x2d   : > { %1348 = vmatprep.subr.bf16.mxu1 %v1513_v30 }
  0x2e   : > { %1401 = vmatmul.mubr.msk.bf16.vlgmr.msra.gmra.mxu0 %vm404_vm1, %v379_v24 }
  0x2f   : > { %1413 = vmatmul.mubr.msk.bf16.vlgmr.msra.gmra.mxu1 %vm404_vm1, %v465_v25  ;;  %1417 = vmatpush3.bf16.msra.mxu0 %v1509_v17 }
  0x30   : > { %1418 = vmatprep.subr.bf16.mxu0 %v1510_v22  ;;  %1424 = vmatprep.mubr.msk.bf16.mxu0 %vm404_vm1, %v548_v26 }
  0x31   : > { %1349 = vmatpush3.bf16.msra.mxu1 %v1514_v32 }
  0x32   : > { %1350 = vmatprep.subr.bf16.mxu1 %v1516_v33 }
  0x33   : > { %1419 = vmatpush3.bf16.msra.mxu0 %v1510_v22 }
  0x34   : > { %1420 = vmatprep.subr.bf16.mxu0 %v1511_v27 }
  0x35   : > { %1351 = vmatpush3.bf16.msra.mxu1 %v1517_v35 }
  0x36   : > { %1352 = vmatprep.subr.bf16.mxu1 %v1519_v36 }
  0x37   : > { %1421 = vmatpush3.bf16.msra.mxu0 %v1511_v27 }
  0x38   : > { %1422 = vmatprep.subr.bf16.mxu0 %v1512_v28 }
  0x39   : > { %1353 = vmatpush3.bf16.msra.mxu1 %v1520_v38  ;;  %v1538_v38 = vld [vmem:[%s1841_s5 + $0x10] sm:$0xff]  }
  0x3a   : > { %1354 = vmatprep.subr.bf16.mxu1 %v1522_v39  ;;  %v1539_v39 = vld [vmem:[%s1841_s5 + $0x8] sm:$0xff]  }
  0x3b   : > { %1423 = vmatpush3.bf16.msra.mxu0 %v1512_v28 }
  0x3c   : > { %1428 = vmatprep.subr.bf16.mxu0 %v1515_v31 }
  0x3d   : > { %1355 = vmatpush3.bf16.msra.mxu1 %v1523_v41  ;;  %v1540_v41 = vld [vmem:[%s1841_s5] sm:$0xff]  }
  0x3e   : > { %1425 = vmatmul.mubr.msk.bf16.vlgmr.msra.gmra.mxu0 %vm404_vm1, %v550_v29  ;;  %1356 = vmatprep.subr.bf16.mxu1 %v1525_v42 }
  0x3f   : > { %1429 = vmatpush3.bf16.msra.mxu0 %v1515_v31 }
  0x40   : > { %1430 = vmatprep.subr.bf16.mxu0 %v1518_v34 }
  0x41   : > { %1357 = vmatpush3.bf16.msra.mxu1 %v1526_v44 }
  0x42   : > { %1358 = vmatprep.subr.bf16.mxu1 %v1528_v45 }
  0x43   : > { %1431 = vmatpush3.bf16.msra.mxu0 %v1518_v34 }
  0x44   : > { %1432 = vmatprep.subr.bf16.mxu0 %v1521_v37 }
  0x45   : > { %1359 = vmatpush3.bf16.msra.mxu1 %v1529_v47 }
  0x46   : > { %1360 = vmatprep.subr.bf16.mxu1 %v1531_v48 }
  0x47   : > { %1433 = vmatpush3.bf16.msra.mxu0 %v1521_v37 }
  0x48   : > { %1434 = vmatprep.subr.bf16.mxu0 %v1524_v40 }
  0x49   : > { %1361 = vmatpush3.bf16.msra.mxu1 %v1532_v50 }
  0x4a   : > { %1362 = vmatprep.subr.bf16.mxu1 %v1534_v51 }
  0x4b   : > { %1435 = vmatpush3.bf16.msra.mxu0 %v1524_v40 }
  0x4c   : > { %1436 = vmatprep.subr.bf16.mxu0 %v1527_v43 }
  0x4d   : > { %1363 = vmatpush3.bf16.msra.mxu1 %v1535_v52 }
  0x4e   : > { %1448 = vmatprep.subr.bf16.mxu1 %v1537_v54 }
  0x4f   : > { %1437 = vmatpush3.bf16.msra.mxu0 %v1527_v43 }
  0x50   : > { %1438 = vmatprep.subr.bf16.mxu0 %v1530_v46 }
  0x53   : > { %1439 = vmatpush3.bf16.msra.mxu0 %v1530_v46 }
  0x54   : > { %1440 = vmatprep.subr.bf16.mxu0 %v1533_v49 }
  0x57   : > { %1441 = vmatpush3.bf16.msra.mxu0 %v1533_v49  ;;  %v1275_v49 = vld [vmem:[%s1840_s4] ss:$0 sm:$0xff] }
  0x58   : > { %1442 = vmatprep.subr.bf16.mxu0 %v1536_v53 }
  0x5b   : > { %1443 = vmatpush3.bf16.msra.mxu0 %v1536_v53 }
  0xee   : > { %v1402_v55 = vpop.f32.mrf.mxu0 }
  0xef   : > { %v1414_v56 = vpop.f32.mrf.mxu1 }
  0xf0   : > { %v445_v57 = vpop.f32.mrf.mxu0  ;;  %v539_v0 = vadd.f32 %v1414_v56, %v1402_v55 }
  0xf1   : > { %v530_v59 = vpop.f32.mrf.mxu1 }
  0xf2   : > { %v1403_v60 = vpop.f32.mrf.mxu0  ;;  %v531_v3 = vadd.f32 %v530_v59, %v445_v57 }
  0xf3   : > { %v1415_v62 = vpop.f32.mrf.mxu1 }
  0xf4   : > { %v448_v63 = vpop.f32.mrf.mxu0  ;;  %v542_v7 = vadd.f32 %v1415_v62, %v1403_v60 }
  0xf5   : > { %v533_v4 = vpop.f32.mrf.mxu1 }
  0xf6   : > { %v534_v14 = vadd.f32 %v533_v4, %v448_v63 }
  0xfe   : > { %v1426_v1 = vpop.f32.mrf.mxu0 }
  0xff   : > { %v632_v5 = vadd.f32 %v1426_v1, %v539_v0 }
 0x100   : > { %v615_v6 = vpop.f32.mrf.mxu0 }
 0x101   : > { %v630_v9 = vadd.f32 %v615_v6, %v531_v3  ;;  %v643_v18 = vadd.f32 %v1274_v8, %v632_v5 }
 0x102   : > { %v1427_v11 = vpop.f32.mrf.mxu0 }
 0x103   : > { %v641_v15 = vadd.f32 %v1274_v8, %v630_v9  ;;  %v633_v17 = vadd.f32 %v1427_v11, %v542_v7  ;;  %v647_v25 = vmax.f32 %v643_v18, 0.0 }
 0x104   : > { %v618_v19 = vpop.f32.mrf.mxu0 }
 0x105   : > { %v644_v20 = vadd.f32 %v1274_v8, %v633_v17  ;;  %v631_v21 = vadd.f32 %v618_v19, %v534_v14  ;;  %v645_v22 = vmax.f32 %v641_v15, 0.0 }
 0x107   : > { %v648_v23 = vmax.f32 %v644_v20, 0.0  ;;  %v642_v24 = vadd.f32 %v1274_v8, %v631_v21  ;;  %v680_v28 = vsel %vm660_vm5, %v645_v22, 0.0 }
 0x109   : > { %v683_v26 = vsel %vm667_vm4, %v648_v23, 0.0  ;;  %v646_v27 = vmax.f32 %v642_v24, 0.0  ;;  %v1304_v40 = vpack.c.bf16 %v648_v23, %v647_v25 }
 0x10a   : > { %v685_v29 = vpack.c.bf16 %v683_v26, %v647_v25 }
 0x10b   : > { %v684_v30 = vpack.c.bf16 %v646_v27, %v680_v28  ;;  %v1301_v35 = vpack.c.bf16 %v646_v27, %v645_v22 }
 0x10c   : > { %v690_v31 = vrot.slane %v685_v29, 1  ;;  %v696_v32 = vrot.slane %v685_v29, 2 }
 0x10d   : > { %v689_v33 = vrot.slane %v684_v30, 1  ;;  %v695_v34 = vrot.slane %v684_v30, 2 }
 0x10f   : > { %v691_v36 = vsel %vm688_vm6, %v689_v33, %v690_v31  ;;  %v697_v37 = vsel %vm694_vm7, %v695_v34, %v696_v32 }
 0x110   : > { %931 = vmatprep.mubr.bf16.mxu1 %v691_v36  ;;  %1444 = vmatprep.mubr.bf16.mxu0 %v697_v37 }
 0x111   : > { %1302 = vmatmul.mubr.msk.bf16.vlgmr.msra.gmra.mxu1 %vm1300_vm9, %v1301_v35  ;;  %1445 = vmatmul.mubr.bf16.vlgmr.msra.gmra.mxu0 %v696_v32 }
 0x112   : > { %1449 = vmatpush3.bf16.msra.mxu1 %v1537_v54  ;;  %939 = vmatprep.mubr.bf16.mxu1 %v690_v31  ;;  %v653_v54 = vadd.s32 16, %v1789_v61 }
 0x113   : > { %1450 = vmatprep.subr.bf16.mxu1 %v1538_v38 }
 0x114   : > { %vm1102_vm11 = vcmp.lt.s32.totalorder %v653_v54, 20 }
 0x116   : > { %1451 = vmatpush3.bf16.msra.mxu1 %v1538_v38 }
 0x117   : > { %1452 = vmatprep.subr.bf16.mxu1 %v1539_v39 }
 0x119   : > { %1305 = vmatmul.mubr.msk.bf16.gmra.mxu1 %vm1303_vm10, %v1304_v40 }
 0x11a   : > { %1453 = vmatpush3.bf16.msra.mxu1 %v1539_v39  ;;  %1456 = vmatprep.mubr.msk.bf16.mxu1 %vm404_vm1, %v1692_v10 }
 0x11b   : > { %1454 = vmatprep.subr.bf16.mxu1 %v1540_v41 }
 0x11e   : > { %1455 = vmatpush3.bf16.msra.mxu1 %v1540_v41 }
 0x121   : > { %1457 = vmatmul.mubr.msk.bf16.vlgmr.msra.gmra.mxu1 %vm404_vm1, %v1694_v12 }
 0x1d1   : > { %v1364_v42 = vpop.f32.mrf.mxu1  ;;  %v1446_v45 = vpop.f32.mrf.mxu0 }
 0x1d3   : > { %v1365_v43 = vpop.f32.mrf.mxu1  ;;  %v982_v50 = vpop.f32.mrf.mxu0 }
 0x1d4   : > { %v1366_v48 = vadd.f32 %v1365_v43, %v1364_v42 }
 0x1d5   : > { %v1367_v44 = vpop.f32.mrf.mxu1  ;;  %v1447_v56 = vpop.f32.mrf.mxu0 }
 0x1d6   : > { %v934_v55 = vadd.f32 %v1366_v48, %v1275_v49 }
 0x1d7   : > { %v1368_v46 = vpop.f32.mrf.mxu1  ;;  %v985_v4 = vpop.f32.mrf.mxu0 }
 0x1d8   : > { %v1369_v52 = vadd.f32 %v1368_v46, %v1367_v44  ;;  %v983_v0 = vadd.f32 %v982_v50, %v934_v55 }
 0x1d9   : > { %v1370_v47 = vpop.f32.mrf.mxu1 }
 0x1da   : > { %v937_v59 = vadd.f32 %v1369_v52, %v1275_v49  ;;  %v997_v13 = vmax.f32 %v983_v0, 0.0 }
 0x1db   : > { %v1371_v51 = vpop.f32.mrf.mxu1 }
 0x1dc   : > { %v1372_v10 = vadd.f32 %v1371_v51, %v1370_v47  ;;  %v986_v5 = vadd.f32 %v985_v4, %v937_v59 }
 0x1dd   : > { %v1373_v53 = vpop.f32.mrf.mxu1 }
 0x1de   : > { %v942_v12 = vadd.f32 %v1372_v10, %v1275_v49  ;;  %v998_v17 = vmax.f32 %v986_v5, 0.0 }
 0x1df   : > { %v1374_v57 = vpop.f32.mrf.mxu1 }
 0x1e0   : > { %v991_v60 = vadd.f32 %v1446_v45, %v942_v12  ;;  %v1375_v62 = vadd.f32 %v1374_v57, %v1373_v53 }
 0x1e1   : > { %v1458_v63 = vpop.f32.mrf.mxu1 }
 0x1e2   : > { %v999_v1 = vmax.f32 %v991_v60, 0.0  ;;  %v945_v2 = vadd.f32 %v1375_v62, %v1275_v49  ;;  %v1089_v3 = vadd.f32 %v1458_v63, %v1306_v58 }
 0x1e3   : > { %v1080_v61 = vpop.f32.mrf.mxu1 }
 0x1e4   : > { %v994_v6 = vadd.f32 %v1447_v56, %v945_v2  ;;  %v1114_v7 = vsel %vm1102_vm11, %v1089_v3, 0.0  ;;  %v1081_v8 = vadd.f32 %v1306_v58, %v1080_v61 }
 0x1e5   : > { %v1118_v9 = vadd.f32 %v1114_v7, %v999_v1  ;;  %v1459_v11 = vpop.f32.mrf.mxu1 }
 0x1e6   : > { %v1000_v14 = vmax.f32 %v994_v6, 0.0  ;;  %v1116_v19 = vadd.f32 %v1081_v8, %v997_v13 }
 0x1e7   : > { %v1122_v15 = vmax.f32 %v1118_v9, 0.0  ;;  %v1083_v16 = vpop.f32.mrf.mxu1 }
 0x1e8   : > { %v1123_v18 = vmax.f32 %v1000_v14, 0.0  ;;  %v1084_v20 = vadd.f32 %v1306_v58, %v1083_v16  ;;  %v1120_v24 = vmax.f32 %v1116_v19, 0.0 }
 0x1e9   : > { %v1323_v21 = vpack.c.bf16 %v1122_v15, %v1122_v15 }
 0x1ea   : > { %v1324_v22 = vpack.c.bf16 %v1123_v18, %v1123_v18  ;;  %v1117_v23 = vadd.f32 %v1084_v20, %v998_v17 }
 0x1eb   : > { %1142 = vst [vmem:[%s331_s10 + $0x8] sm:$0xf] %v1323_v21 }
 0x1ec   : > { %1143 = vst [vmem:[%s331_s10 + $0xc] sm:$0x3] %v1324_v22  ;;  %v1121_v25 = vmax.f32 %v1117_v23, 0.0 }
 0x1ee   : > { %v1328_v26 = vpack.c.bf16 %v1121_v25, %v1120_v24 }
 0x1f0   : > { %1329 = vst [vmem:[%s331_s10] sm:$0xff] %v1328_v26  }
 0x1f1 PF: > { %s18_s26 = sadd.s32 1, %s1593_s26   ;;  %s1846_s24 = smov %s1589_s25 }
 0x1f2   : > { %p15_p2 = scmp.ge.s32.totalorder %s18_s26, 4   ;;  %s1847_s25 = smov %s1849_s28 }
 0x1f4   :  { %17 = sbr.rel (!%p15_p2) target bundleno = 2 (0x2), region = 83 }
 0x1f9   :  { %1174 = vsyncpa [#allocation3], 1 }
 0x1fa   :  { %1176 = vsyncpa [#allocation3 + $0x1], 1 }

// kernel: _lambda_.5
= control target key start
LH: loop header
LB: loop body
LE: loop exit
PB: predicated region body
PF: predicated region fallthrough
CT: control target
= control target key end

     0   :  { %12 = vsyncpa [#allocation3], 0  ;;  %s2707_s24 = smov 0   ;;  %s2709_s25 = smov 0   ;;  %s3151_s0 = inlined_call_operand.vmem [shape: bf16[2,44,128], index: 0, kind: input, shape index: {}]   ;;  %s3152_s1 = inlined_call_operand.vmem [shape: bf16[384,256], index: 1, kind: input, shape index: {}]   ;;  %s3153_s2 = inlined_call_operand.vmem [shape: f32[1,256], index: 2, kind: input, shape index: {}]   ;;  %s3154_s3 = inlined_call_operand.hbm [shape: bf16[768,256], index: 3, kind: input, shape index: {}]   ;;  %s3155_s4 = inlined_call_operand.vmem [shape: f32[1,256], index: 4, kind: input, shape index: {}]   ;;  %s3156_s5 = inlined_call_operand.vmem [shape: bf16[128,256], index: 5, kind: input, shape index: {}]   ;;  %s3157_s6 = inlined_call_operand.vmem [shape: f32[1,256], index: 6, kind: input, shape index: {}]   ;;  %s3158_s7 = inlined_call_operand.vmem [shape: bf16[2,44,256], index: 7, kind: output, shape index: {}]  }
   0x1   :  { %s2711_s26 = smov 0  }
   0x2 LB: > { %s2128_s27 = sadd.s32 4294967295, %s2658_s26   ;;  %s30_s28 = sadd.s32 1, %s2654_s25  ;;  %s2658_s26 = sphi %s2711_s26, %s18_s26   ;;  %s2654_s25 = sphi %s2709_s25, %s3164_s25   ;;  %s2650_s24 = sphi %s2707_s24, %s3163_s24  }
   0x3   : > { %p32_p0 = scmp.ge.s32.totalorder %s30_s28, 2  ;;  %p2130_p1 = scmp.ge.s32.totalorder %s2658_s26, 1 }
   0x4   : > { %p217_p2 = scmp.lt.s32.totalorder %s2658_s26, 3  ;;  %p2732_p4 = scmp.eq.s32.totalorder %s2128_s27, 0 }
   0x5   : > { %s3166_s28 = smov (%p32_p0, %s30_s28), 0  ;;  %s2660_s8 = smov [#allocation2]  }
   0x6   : > { %p2728_p3 = pnand %p2130_p1, %p217_p2  ;;  %s235_s9 = sshll.u32 %s2660_s8, 4  ;;  %s236_s9 = int_to_ptr.vmem [resolvable:$true] %s235_s9 }
   0x7   : > { %s2617_s10 = scalar_lea.vmem %s236_s9, 12288  ;;  %p2625_p11 = scmp.lt.s32.totalorder %s236_s9, %s236_s9 }
   0x8   : > { %p2326_p5 = pneg %p2728_p3  ;;  %p2618_p8 = scmp.ne.s32.totalorder %s236_s9, %s2617_s10 }
   0x9   : > { %p2626_p12 = scmp.lt.s32.totalorder %s2617_s10, %s2617_s10 }
   0xa   : > { %p2327_p6 = pnand %p2732_p4, %p2326_p5 }
   0xb   : > { %p2627_p13 = por %p2626_p12, %p2625_p11 }
   0xc   : > { %p2608_p7 = pneg %p2327_p6 }
   0xe   : > { %p2620_p9 = pnand %p2618_p8, %p2608_p7 }
  0x10   : > { %p2621_p10 = pneg %p2620_p9 }
  0x12   : > { %p2628_p0 = pnand %p2627_p13, %p2621_p10 }
  0x14   : > { %2631 = shalt.err (!%p2628_p0)
}
  0x15   : > { %s2661_s11 = smov 128   ;;  %s2662_s12 = smov 8  }
  0x16   : > { %2329 = dma.hbm_to_vmem [thread:$0]  (!%p2327_p6), %s3154_s3, 12288, %s236_s9, [#allocation3], %s2661_s11, %s2661_s11, %s2662_s12  }
  0x17   : > { %273 = sbr.rel (%p2728_p3) target bundleno = 591 (0x24f), region = 48 }
  0x1c   : > { %2645 = dma.done.wait (%p2732_p4), [#allocation3], 12288  }
  0x1d   : > { %2647 = vsyncadd (%p2732_p4), [#allocation3], 4294955008  ;;  %v2663_v0 = vmov 0   ;;  %v2363_v1 = vld [vmem:[%s3152_s1 + $0x74] ss:$8 sps:$4 sm:$0xff]   ;;  %p315_p1 = scmp.lt.s32.totalorder %s2650_s24, 1 }
  0x1e   : > { %789 = vmatprep.mubr.bf16.mxu1 %v2663_v0  ;;  %v2365_v2 = vld [vmem:[%s3152_s1 + $0x70] ss:$8 sps:$4 sm:$0xff]   ;;  %686 = vmatprep.subr.bf16.mxu0 %v2363_v1  ;;  %v2366_v3 = vld [vmem:[%s3152_s1 + $0x64] ss:$8 sps:$4 sm:$0xff]   ;;  %v2368_v4 = vld [vmem:[%s3152_s1 + $0x60] ss:$8 sps:$4 sm:$0xff]  }
  0x1f   : > { %687 = vmatpush1.bf16.msra.mxu0 %v2365_v2  ;;  %v2369_v5 = vld [vmem:[%s3152_s1 + $0x54] ss:$8 sps:$4 sm:$0xff]   ;;  %v2371_v6 = vld [vmem:[%s3152_s1 + $0x50] ss:$8 sps:$4 sm:$0xff]   ;;  %v2372_v7 = vld [vmem:[%s3152_s1 + $0x44] ss:$8 sps:$4 sm:$0xff]  }
  0x20   : > { %688 = vmatprep.subr.bf16.mxu0 %v2366_v3  ;;  %v2374_v8 = vld [vmem:[%s3152_s1 + $0x40] ss:$8 sps:$4 sm:$0xff]   ;;  %v2386_v9 = vld [vmem:[%s3152_s1 + $0x174] ss:$8 sps:$4 sm:$0xff]   ;;  %v2389_v10 = vld [vmem:[%s3152_s1 + $0x170] ss:$8 sps:$4 sm:$0xff]  }
  0x21   : > { %v2375_v11 = vld [vmem:[%s3152_s1 + $0x34] ss:$8 sps:$4 sm:$0xff]   ;;  %757 = vmatprep.subr.bf16.mxu1 %v2386_v9  ;;  %v2392_v12 = vld [vmem:[%s3152_s1 + $0x164] ss:$8 sps:$4 sm:$0xff]   ;;  %v2395_v13 = vld [vmem:[%s3152_s1 + $0x160] ss:$8 sps:$4 sm:$0xff]  }
  0x22   : > { %758 = vmatpush1.bf16.msra.mxu1 %v2389_v10  ;;  %v2377_v14 = vld [vmem:[%s3152_s1 + $0x30] ss:$8 sps:$4 sm:$0xff]   ;;  %v2378_v15 = vld [vmem:[%s3152_s1 + $0x24] ss:$8 sps:$4 sm:$0xff]   ;;  %v2398_v16 = vld [vmem:[%s3152_s1 + $0x154] ss:$8 sps:$4 sm:$0xff]  }
  0x23   : > { %689 = vmatpush1.bf16.msra.mxu0 %v2368_v4  ;;  %759 = vmatprep.subr.bf16.mxu1 %v2392_v12  ;;  %v2401_v17 = vld [vmem:[%s3152_s1 + $0x150] ss:$8 sps:$4 sm:$0xff]   ;;  %v2380_v18 = vld [vmem:[%s3152_s1 + $0x20] ss:$8 sps:$4 sm:$0xff]   ;;  %v2404_v19 = vld [vmem:[%s3152_s1 + $0x144] ss:$8 sps:$4 sm:$0xff]  }
  0x24   : > { %690 = vmatprep.subr.bf16.mxu0 %v2369_v5  ;;  %v2381_v20 = vld [vmem:[%s3152_s1 + $0x14] ss:$8 sps:$4 sm:$0xff]   ;;  %s3168_s24 = smov (!%p315_p1, %s2650_s24), 1  ;;  %v2383_v21 = vld [vmem:[%s3152_s1 + $0x10] ss:$8 sps:$4 sm:$0xff]   ;;  %vm362_vm0 = vcmask 1045504  }
  0x25   : > { %v2407_v22 = vld [vmem:[%s3152_s1 + $0x140] ss:$8 sps:$4 sm:$0xff]   ;;  %v2410_v23 = vld [vmem:[%s3152_s1 + $0x134] ss:$8 sps:$4 sm:$0xff]   ;;  %v2384_v24 = vld [vmem:[%s3152_s1 + $0x4] ss:$8 sps:$4 sm:$0xff]  }
  0x26   : > { %760 = vmatpush1.bf16.msra.mxu1 %v2395_v13  ;;  %s2320_s29 = smul.u32 24, %s3168_s24  ;;  %v2413_v25 = vld [vmem:[%s3152_s1 + $0x130] ss:$8 sps:$4 sm:$0xff]   ;;  %v2388_v26 = vld [vmem:[%s3152_s1] ss:$8 sps:$4 sm:$0xff]   ;;  %v363_v34 = vrot.slane %v2663_v0, 2 }
  0x27   : > { %691 = vmatpush1.bf16.msra.mxu0 %v2371_v6  ;;  %761 = vmatprep.subr.bf16.mxu1 %v2398_v16  ;;  %v2416_v27 = vld [vmem:[%s3152_s1 + $0x124] ss:$8 sps:$4 sm:$0xff]   ;;  %v2390_v28 = vld [vmem:[%s3152_s1 + $0xf4] ss:$8 sps:$4 sm:$0xff]   ;;  %v2394_v29 = vld [vmem:[%s3152_s1 + $0xf0] ss:$8 sps:$4 sm:$0xff]  }
  0x28   : > { %692 = vmatprep.subr.bf16.mxu0 %v2372_v7  ;;  %s2842_s17 = scalar_lea.vmem %s3151_s0, %s2320_s29  ;;  %v2419_v30 = vld [vmem:[%s3152_s1 + $0x120] ss:$8 sps:$4 sm:$0xff]   ;;  %v2422_v31 = vld [vmem:[%s3152_s1 + $0x114] ss:$8 sps:$4 sm:$0xff]   ;;  %v2396_v32 = vld [vmem:[%s3152_s1 + $0xe4] ss:$8 sps:$4 sm:$0xff]  }
  0x29   : > { %v2857_v33 = vld [vmem:[%s2842_s17] sm:$0xff]   ;;  %v2425_v36 = vld [vmem:[%s3152_s1 + $0x110] ss:$8 sps:$4 sm:$0xff]   ;;  %v2402_v39 = vld [vmem:[%s3152_s1 + $0xd4] ss:$8 sps:$4 sm:$0xff]   ;;  %v375_v41 = vrot.slane %v2663_v0, 4 }
  0x2a   : > { %762 = vmatpush1.bf16.msra.mxu1 %v2401_v17  ;;  %v2400_v35 = vld [vmem:[%s3152_s1 + $0xe0] ss:$8 sps:$4 sm:$0xff]   ;;  %v364_v37 = vrot.slane %v2857_v33, 2  ;;  %v2428_v38 = vld [vmem:[%s3152_s1 + $0x104] ss:$8 sps:$4 sm:$0xff]   ;;  %v376_v44 = vrot.slane %v2857_v33, 4 }
  0x2b   : > { %693 = vmatpush1.bf16.msra.mxu0 %v2374_v8  ;;  %763 = vmatprep.subr.bf16.mxu1 %v2404_v19  ;;  %v2406_v42 = vld [vmem:[%s3152_s1 + $0xd0] ss:$8 sps:$4 sm:$0xff]   ;;  %v2431_v43 = vld [vmem:[%s3152_s1 + $0x100] ss:$8 sps:$4 sm:$0xff]   ;;  %vm374_vm1 = vcmask 1043456   ;;  %vm2665_vm3 = vmmov 1  }
  0x2c   : > { %694 = vmatprep.subr.bf16.mxu0 %v2375_v11  ;;  %v365_v40 = vsel %vm362_vm0, %v363_v34, %v364_v37  ;;  %v2440_v45 = vld [vmem:[#allocation2 + $0x74] ss:$8 sps:$4 sm:$0xff]   ;;  %v2408_v46 = vld [vmem:[%s3152_s1 + $0xc4] ss:$8 sps:$4 sm:$0xff]   ;;  %v2412_v47 = vld [vmem:[%s3152_s1 + $0xc0] ss:$8 sps:$4 sm:$0xff]   ;;  %v377_v48 = vsel %vm374_vm1, %v375_v41, %v376_v44 }
  0x2d   : > { %718 = vmatprep.mubr.bf16.mxu0 %v365_v40  ;;  %v2438_v49 = vld [vmem:[#allocation2 + $0x70] ss:$8 sps:$4 sm:$0xff]   ;;  %v2443_v50 = vld [vmem:[#allocation2 + $0x64] ss:$8 sps:$4 sm:$0xff]   ;;  %v2414_v51 = vld [vmem:[%s3152_s1 + $0xb4] ss:$8 sps:$4 sm:$0xff]  }
  0x2e   : > { %764 = vmatpush1.bf16.msra.mxu1 %v2407_v22  ;;  %v2895_v52 = vld [vmem:[%s2842_s17 + $0x8] sm:$0xff]   ;;  %v2418_v53 = vld [vmem:[%s3152_s1 + $0xb0] ss:$8 sps:$4 sm:$0xff]   ;;  %v2446_v56 = vld [vmem:[#allocation2 + $0x54] ss:$8 sps:$4 sm:$0xff]   ;;  %s2321_s21 = smul.u32 48, %s3168_s24 }
  0x2f   : > { %695 = vmatpush1.bf16.msra.mxu0 %v2377_v14  ;;  %765 = vmatprep.subr.bf16.mxu1 %v2410_v23  ;;  %v378_v54 = vrot.slane %v2895_v52, 4  ;;  %v2441_v55 = vld [vmem:[#allocation2 + $0x60] ss:$8 sps:$4 sm:$0xff]   ;;  %v2420_v57 = vld [vmem:[%s3152_s1 + $0xa4] ss:$8 sps:$4 sm:$0xff]   ;;  %v366_v10 = vrot.slane %v2895_v52, 2 }
  0x30   : > { %696 = vmatprep.subr.bf16.mxu0 %v2378_v15  ;;  %v2424_v58 = vld [vmem:[%s3152_s1 + $0xa0] ss:$8 sps:$4 sm:$0xff]   ;;  %v2444_v60 = vld [vmem:[#allocation2 + $0x50] ss:$8 sps:$4 sm:$0xff]   ;;  %v2449_v61 = vld [vmem:[#allocation2 + $0x44] ss:$8 sps:$4 sm:$0xff]   ;;  %s3118_s23 = scalar_lea.vmem %s3158_s7, %s2321_s21 }
  0x31   : > { %v379_v59 = vsel %vm374_vm1, %v376_v44, %v378_v54  ;;  %v2426_v62 = vld [vmem:[%s3152_s1 + $0x94] ss:$8 sps:$4 sm:$0xff]   ;;  %v2430_v1 = vld [vmem:[%s3152_s1 + $0x90] ss:$8 sps:$4 sm:$0xff]   ;;  %v2447_v3 = vld [vmem:[#allocation2 + $0x40] ss:$8 sps:$4 sm:$0xff]   ;;  %v367_v16 = vsel %vm362_vm0, %v364_v37, %v366_v10 }
  0x32   : > { %766 = vmatpush1.bf16.msra.mxu1 %v2413_v25  ;;  %v2913_v63 = vld [vmem:[%s2842_s17 + $0x10] sm:$0x3f]   ;;  %v2432_v5 = vld [vmem:[%s3152_s1 + $0x84] ss:$8 sps:$4 sm:$0xff]   ;;  %v2435_v6 = vld [vmem:[%s3152_s1 + $0x80] ss:$8 sps:$4 sm:$0xff]  }
  0x33   : > { %697 = vmatpush1.bf16.msra.mxu0 %v2380_v18  ;;  %767 = vmatprep.subr.bf16.mxu1 %v2416_v27  ;;  %v380_v2 = vrot.slane %v2913_v63, 4  ;;  %v2455_v4 = vld [vmem:[#allocation2 + $0x34] ss:$8 sps:$4 sm:$0xff]   ;;  %v2453_v8 = vld [vmem:[#allocation2 + $0x30] ss:$8 sps:$4 sm:$0xff]  }
  0x34   : > { %698 = vmatprep.subr.bf16.mxu0 %v2381_v20  ;;  %v2461_v9 = vld [vmem:[#allocation2 + $0x24] ss:$8 sps:$4 sm:$0xff]   ;;  %v2452_v11 = vld [vmem:[#allocation2 + $0x174] ss:$8 sps:$4 sm:$0xff]   ;;  %v2450_v12 = vld [vmem:[#allocation2 + $0x170] ss:$8 sps:$4 sm:$0xff]  }
  0x35   : > { %v381_v7 = vsel %vm374_vm1, %v378_v54, %v380_v2  ;;  %v2458_v13 = vld [vmem:[#allocation2 + $0x164] ss:$8 sps:$4 sm:$0xff]   ;;  %v2459_v14 = vld [vmem:[#allocation2 + $0x20] ss:$8 sps:$4 sm:$0xff]   ;;  %v2467_v15 = vld [vmem:[#allocation2 + $0x14] ss:$8 sps:$4 sm:$0xff]  }
  0x36   : > { %768 = vmatpush1.bf16.msra.mxu1 %v2419_v30  ;;  %v2465_v17 = vld [vmem:[#allocation2 + $0x10] ss:$8 sps:$4 sm:$0xff]   ;;  %v2456_v18 = vld [vmem:[#allocation2 + $0x160] ss:$8 sps:$4 sm:$0xff]   ;;  %v2473_v19 = vld [vmem:[#allocation2 + $0x4] ss:$8 sps:$4 sm:$0xff]  }
  0x37   : > { %699 = vmatpush1.bf16.msra.mxu0 %v2383_v21  ;;  %769 = vmatprep.subr.bf16.mxu1 %v2422_v31  ;;  %v2464_v20 = vld [vmem:[#allocation2 + $0x154] ss:$8 sps:$4 sm:$0xff]   ;;  %v368_v21 = vrot.slane %v2913_v63, 2  ;;  %v2471_v22 = vld [vmem:[#allocation2] ss:$8 sps:$4 sm:$0xff]  }
  0x38   : > { %700 = vmatprep.subr.bf16.mxu0 %v2384_v24  ;;  %v2462_v23 = vld [vmem:[#allocation2 + $0x150] ss:$8 sps:$4 sm:$0xff]   ;;  %v2470_v24 = vld [vmem:[#allocation2 + $0x144] ss:$8 sps:$4 sm:$0xff]   ;;  %v2479_v25 = vld [vmem:[#allocation2 + $0xf4] ss:$8 sps:$4 sm:$0xff]  }
  0x39   : > { %v2477_v27 = vld [vmem:[#allocation2 + $0xf0] ss:$8 sps:$4 sm:$0xff]   ;;  %v2476_v30 = vld [vmem:[#allocation2 + $0x134] ss:$8 sps:$4 sm:$0xff]   ;;  %v2483_v31 = vld [vmem:[#allocation2 + $0xe0] ss:$8 sps:$4 sm:$0xff]  }
  0x3a   : > { %770 = vmatpush1.bf16.msra.mxu1 %v2425_v36  ;;  %v2491_v34 = vld [vmem:[#allocation2 + $0xd4] ss:$8 sps:$4 sm:$0xff]   ;;  %v2489_v36 = vld [vmem:[#allocation2 + $0xd0] ss:$8 sps:$4 sm:$0xff]   ;;  %v2480_v37 = vld [vmem:[#allocation2 + $0x120] ss:$8 sps:$4 sm:$0xff]  }
  0x3b   : > { %701 = vmatpush1.bf16.msra.mxu0 %v2388_v26  ;;  %771 = vmatprep.subr.bf16.mxu1 %v2428_v38  ;;  %v369_v26 = vsel %vm362_vm0, %v366_v10, %v368_v21  ;;  %v2497_v38 = vld [vmem:[#allocation2 + $0xc4] ss:$8 sps:$4 sm:$0xff]   ;;  %v2495_v40 = vld [vmem:[#allocation2 + $0xc0] ss:$8 sps:$4 sm:$0xff]   ;;  %v2486_v41 = vld [vmem:[#allocation2 + $0x110] ss:$8 sps:$4 sm:$0xff]  }
  0x3c   : > { %702 = vmatprep.subr.bf16.mxu0 %v2390_v28  ;;  %v2468_v28 = vld [vmem:[#allocation2 + $0x140] ss:$8 sps:$4 sm:$0xff]   ;;  %v2500_v44 = vld [vmem:[#allocation2 + $0x1f4] ss:$8 sps:$4 sm:$0xff]   ;;  %v2510_v54 = vld [vmem:[#allocation2 + $0x1d0] ss:$8 sps:$4 sm:$0xff]  }
  0x3e   : > { %772 = vmatpush1.bf16.msra.mxu1 %v2431_v43  ;;  %v2492_v43 = vld [vmem:[#allocation2 + $0x100] ss:$8 sps:$4 sm:$0xff]  }
  0x3f   : > { %703 = vmatpush2.bf16.msra.mxu0 %v2394_v29  ;;  %1548 = vmatprep.subr.bf16.mxu1 %v2440_v45  ;;  %v2485_v29 = vld [vmem:[#allocation2 + $0xe4] ss:$8 sps:$4 sm:$0xff]   ;;  %v2498_v45 = vld [vmem:[#allocation2 + $0x1f0] ss:$8 sps:$4 sm:$0xff]  }
  0x40   : > { %704 = vmatprep.subr.bf16.mxu0 %v2396_v32  ;;  %v2474_v32 = vld [vmem:[#allocation2 + $0x130] ss:$8 sps:$4 sm:$0xff]  }
  0x41   : > { %790 = vmatmul.mubr.bf16.vlgmr.msra.gmra.mxu1 %v377_v48  ;;  %v2504_v48 = vld [vmem:[#allocation2 + $0x1e0] ss:$8 sps:$4 sm:$0xff]  }
  0x42   : > { %799 = vmatprep.mubr.bf16.mxu1 %v2663_v0  ;;  %1549 = vmatpush1.bf16.msra.mxu1 %v2438_v49  ;;  %v2506_v49 = vld [vmem:[#allocation2 + $0x1e4] ss:$8 sps:$4 sm:$0xff]  }
  0x43   : > { %705 = vmatpush2.bf16.msra.mxu0 %v2400_v35  ;;  %1550 = vmatprep.subr.bf16.mxu1 %v2443_v50  ;;  %v2482_v35 = vld [vmem:[#allocation2 + $0x124] ss:$8 sps:$4 sm:$0xff]  }
  0x44   : > { %706 = vmatprep.subr.bf16.mxu0 %v2402_v39  ;;  %v2488_v39 = vld [vmem:[#allocation2 + $0x114] ss:$8 sps:$4 sm:$0xff]   ;;  %v2509_v50 = vld [vmem:[#allocation2 + $0xa4] ss:$8 sps:$4 sm:$0xff]  }
  0x46   : > { %1551 = vmatpush1.bf16.msra.mxu1 %v2441_v55  ;;  %v2515_v55 = vld [vmem:[#allocation2 + $0x94] ss:$8 sps:$4 sm:$0xff]  }
  0x47   : > { %707 = vmatpush2.bf16.msra.mxu0 %v2406_v42  ;;  %1552 = vmatprep.subr.bf16.mxu1 %v2446_v56  ;;  %v2494_v42 = vld [vmem:[#allocation2 + $0x104] ss:$8 sps:$4 sm:$0xff]  }
  0x48   : > { %708 = vmatprep.subr.bf16.mxu0 %v2408_v46  ;;  %v2501_v46 = vld [vmem:[#allocation2 + $0xb0] ss:$8 sps:$4 sm:$0xff]   ;;  %v2518_v56 = vld [vmem:[#allocation2 + $0x1c4] ss:$8 sps:$4 sm:$0xff]  }
  0x49   : > { %800 = vmatmul.mubr.bf16.gmra.mxu1 %v379_v59  ;;  %v2521_v59 = vld [vmem:[#allocation2 + $0x84] ss:$8 sps:$4 sm:$0xff]  }
  0x4a   : > { %809 = vmatprep.mubr.bf16.mxu1 %v2663_v0  ;;  %1553 = vmatpush1.bf16.msra.mxu1 %v2444_v60  ;;  %v2524_v60 = vld [vmem:[#allocation2 + $0x1b4] ss:$8 sps:$4 sm:$0xff]  }
  0x4b   : > { %709 = vmatpush2.bf16.msra.mxu0 %v2412_v47  ;;  %1554 = vmatprep.subr.bf16.mxu1 %v2449_v61  ;;  %v2503_v47 = vld [vmem:[#allocation2 + $0xb4] ss:$8 sps:$4 sm:$0xff]   ;;  %v2519_v61 = vld [vmem:[#allocation2 + $0x80] ss:$8 sps:$4 sm:$0xff]  }
  0x4c   : > { %710 = vmatprep.subr.bf16.mxu0 %v2414_v51  ;;  %v2512_v51 = vld [vmem:[#allocation2 + $0x1d4] ss:$8 sps:$4 sm:$0xff]  }
  0x4e   : > { %1555 = vmatpush1.bf16.msra.mxu1 %v2447_v3  ;;  %v2525_v3 = vld [vmem:[#allocation2 + $0x1a0] ss:$8 sps:$4 sm:$0xff]  }
  0x4f   : > { %711 = vmatpush2.bf16.msra.mxu0 %v2418_v53  ;;  %1556 = vmatprep.subr.bf16.mxu1 %v2455_v4  ;;  %v2507_v53 = vld [vmem:[#allocation2 + $0xa0] ss:$8 sps:$4 sm:$0xff]   ;;  %v2533_v4 = vld [vmem:[#allocation2 + $0x194] ss:$8 sps:$4 sm:$0xff]  }
  0x50   : > { %712 = vmatprep.subr.bf16.mxu0 %v2420_v57  ;;  %v2513_v57 = vld [vmem:[#allocation2 + $0x90] ss:$8 sps:$4 sm:$0xff]  }
  0x51   : > { %810 = vmatmul.mubr.bf16.gmra.mxu1 %v381_v7  ;;  %v2537_v7 = vld [vmem:[#allocation2 + $0x180] ss:$8 sps:$4 sm:$0xff]  }
  0x52   : > { %1557 = vmatpush1.bf16.msra.mxu1 %v2453_v8  ;;  %819 = vmatprep.mubr.bf16.mxu1 %v2663_v0  ;;  %v2563_v8 = vld [vmem:[%s3156_s5 + $0x74] ss:$8 sps:$4 sm:$0xff]  }
  0x53   : > { %713 = vmatpush2.bf16.msra.mxu0 %v2424_v58  ;;  %1558 = vmatprep.subr.bf16.mxu1 %v2461_v9  ;;  %v2516_v58 = vld [vmem:[#allocation2 + $0x1c0] ss:$8 sps:$4 sm:$0xff]  }
  0x54   : > { %714 = vmatprep.subr.bf16.mxu0 %v2426_v62  ;;  %v2522_v62 = vld [vmem:[#allocation2 + $0x1b0] ss:$8 sps:$4 sm:$0xff]  }
  0x56   : > { %1559 = vmatpush1.bf16.msra.mxu1 %v2459_v14  ;;  %v436_v14 = vlaneseq }
  0x57   : > { %715 = vmatpush2.bf16.msra.mxu0 %v2430_v1  ;;  %1560 = vmatprep.subr.bf16.mxu1 %v2467_v15  ;;  %v2527_v1 = vld [vmem:[#allocation2 + $0x1a4] ss:$8 sps:$4 sm:$0xff]  }
  0x58   : > { %716 = vmatprep.subr.bf16.mxu0 %v2432_v5  ;;  %v2531_v5 = vld [vmem:[#allocation2 + $0x190] ss:$8 sps:$4 sm:$0xff]  }
  0x59   : > { %820 = vmatmul.mubr.bf16.gmra.mxu1 %v380_v2  ;;  %v2530_v2 = vld [vmem:[#allocation2 + $0x274] ss:$8 sps:$4 sm:$0xff]  }
  0x5a   : > { %1561 = vmatpush1.bf16.msra.mxu1 %v2465_v17  ;;  %v2941_v17 = vshrl.u32 %v436_v14, 7 }
  0x5b   : > { %717 = vmatpush2.bf16.msra.mxu0 %v2435_v6  ;;  %1562 = vmatprep.subr.bf16.mxu1 %v2473_v19  ;;  %v2539_v6 = vld [vmem:[#allocation2 + $0x184] ss:$8 sps:$4 sm:$0xff]  }
  0x5c   : > { %1611 = vmatprep.subr.bf16.mxu0 %v2452_v11 }
  0x5e   : > { %719 = vmatmul.mubr.bf16.vlgmr.msra.gmra.mxu0 %v2663_v0  ;;  %1563 = vmatpush1.bf16.msra.mxu1 %v2471_v22  ;;  %v434_v22 = vld [vmem:[%s3153_s2] sm:$0x3] }
  0x5f   : > { %728 = vmatprep.mubr.bf16.mxu0 %v367_v16  ;;  %1612 = vmatpush1.bf16.msra.mxu0 %v2450_v12 }
  0x60   : > { %1613 = vmatprep.subr.bf16.mxu0 %v2458_v13  ;;  %1564 = vmatprep.subr.bf16.mxu1 %v2479_v25 }
  0x62   : > { %1565 = vmatpush2.bf16.msra.mxu1 %v2477_v27 }
  0x63   : > { %1614 = vmatpush1.bf16.msra.mxu0 %v2456_v18  ;;  %1566 = vmatprep.subr.bf16.mxu1 %v2485_v29 }
  0x64   : > { %1615 = vmatprep.subr.bf16.mxu0 %v2464_v20  ;;  %v2944_v20 = vsub.s32 0, %v2941_v17 }
  0x66   : > { %729 = vmatmul.mubr.bf16.gmra.mxu0 %v2857_v33  ;;  %1567 = vmatpush2.bf16.msra.mxu1 %v2483_v31 }
  0x67   : > { %738 = vmatprep.mubr.bf16.mxu0 %v369_v26  ;;  %1616 = vmatpush1.bf16.msra.mxu0 %v2462_v23  ;;  %v2950_v23 = vsub.s32 1, %v2941_v17  ;;  %v439_v26 = vrot.slane %v434_v22, %v2944_v20 }
  0x68   : > { %1617 = vmatprep.subr.bf16.mxu0 %v2470_v24  ;;  %1568 = vmatprep.subr.bf16.mxu1 %v2491_v34 }
  0x69   : > { %v443_v29 = vrot.slane %v434_v22, %v2950_v23 }
  0x6a   : > { %1569 = vmatpush2.bf16.msra.mxu1 %v2489_v36 }
  0x6b   : > { %1618 = vmatpush1.bf16.msra.mxu0 %v2468_v28  ;;  %1570 = vmatprep.subr.bf16.mxu1 %v2497_v38 }
  0x6c   : > { %1619 = vmatprep.subr.bf16.mxu0 %v2476_v30 }
  0x6e   : > { %739 = vmatmul.mubr.bf16.gmra.mxu0 %v2895_v52  ;;  %1571 = vmatpush2.bf16.msra.mxu1 %v2495_v40 }
  0x6f   : > { %1620 = vmatpush1.bf16.msra.mxu0 %v2474_v32  ;;  %748 = vmatprep.mubr.bf16.mxu0 %v368_v21 }
  0x70   : > { %1621 = vmatprep.subr.bf16.mxu0 %v2482_v35  ;;  %1572 = vmatprep.subr.bf16.mxu1 %v2503_v47 }
  0x72   : > { %1573 = vmatpush2.bf16.msra.mxu1 %v2501_v46 }
  0x73   : > { %1622 = vmatpush1.bf16.msra.mxu0 %v2480_v37  ;;  %1574 = vmatprep.subr.bf16.mxu1 %v2509_v50 }
  0x74   : > { %1623 = vmatprep.subr.bf16.mxu0 %v2488_v39 }
  0x76   : > { %749 = vmatmul.mubr.bf16.gmra.mxu0 %v2913_v63  ;;  %1575 = vmatpush2.bf16.msra.mxu1 %v2507_v53  ;;  %v2664_v53 = vmov 0.0  }
  0x77   : > { %1624 = vmatpush1.bf16.msra.mxu0 %v2486_v41  ;;  %1576 = vmatprep.subr.bf16.mxu1 %v2515_v55  ;;  %v2528_v55 = vld [vmem:[#allocation2 + $0x270] ss:$8 sps:$4 sm:$0xff]  }
  0x78   : > { %1625 = vmatprep.subr.bf16.mxu0 %v2494_v42 }
  0x7a   : > { %1577 = vmatpush2.bf16.msra.mxu1 %v2513_v57 }
  0x7b   : > { %1626 = vmatpush1.bf16.msra.mxu0 %v2492_v43  ;;  %1578 = vmatprep.subr.bf16.mxu1 %v2521_v59 }
  0x7c   : > { %1627 = vmatprep.subr.bf16.mxu0 %v2500_v44 }
  0x7e   : > { %1579 = vmatpush2.bf16.msra.mxu1 %v2519_v61 }
  0x7f   : > { %1628 = vmatpush2.bf16.msra.mxu0 %v2498_v45  ;;  %1674 = vmatprep.subr.bf16.mxu1 %v2530_v2 }
  0x80   : > { %1629 = vmatprep.subr.bf16.mxu0 %v2506_v49 }
  0x83   : > { %1630 = vmatpush2.bf16.msra.mxu0 %v2504_v48 }
  0x84   : > { %1631 = vmatprep.subr.bf16.mxu0 %v2512_v51 }
  0x87   : > { %1632 = vmatpush2.bf16.msra.mxu0 %v2510_v54 }
  0x88   : > { %1633 = vmatprep.subr.bf16.mxu0 %v2518_v56 }
  0x8b   : > { %1634 = vmatpush2.bf16.msra.mxu0 %v2516_v58 }
  0x8c   : > { %1635 = vmatprep.subr.bf16.mxu0 %v2524_v60  ;;  %v2536_v60 = vld [vmem:[#allocation2 + $0x264] ss:$8 sps:$4 sm:$0xff]  }
  0x8f   : > { %1636 = vmatpush2.bf16.msra.mxu0 %v2522_v62  ;;  %v849_v62 = vadd.s32 40, %v2941_v17 }
  0x90   : > { %1637 = vmatprep.subr.bf16.mxu0 %v2527_v1 }
  0x93   : > { %1638 = vmatpush2.bf16.msra.mxu0 %v2525_v3 }
  0x94   : > { %1639 = vmatprep.subr.bf16.mxu0 %v2533_v4 }
  0x97   : > { %1640 = vmatpush2.bf16.msra.mxu0 %v2531_v5 }
  0x98   : > { %1641 = vmatprep.subr.bf16.mxu0 %v2539_v6  ;;  %v2534_v6 = vld [vmem:[#allocation2 + $0x260] ss:$8 sps:$4 sm:$0xff]  }
  0x9b   : > { %1642 = vmatpush2.bf16.msra.mxu0 %v2537_v7 }
  0x9c   : > { %1857 = vmatprep.subr.bf16.mxu0 %v2563_v8 }
 0x101   : > { %v791_v9 = vpop.f32.mrf.mxu1 }
 0x103   : > { %v793_v10 = vpop.f32.mrf.mxu1 }
 0x104   : > { %v2542_v10 = vld [vmem:[#allocation2 + $0x254] ss:$8 sps:$4 sm:$0xff]  }
 0x105   : > { %v795_v11 = vpop.f32.mrf.mxu1 }
 0x107   : > { %v797_v12 = vpop.f32.mrf.mxu1 }
 0x109   : > { %v801_v13 = vpop.f32.mrf.mxu1 }
 0x10b   : > { %v803_v15 = vpop.f32.mrf.mxu1 }
 0x10d   : > { %v805_v16 = vpop.f32.mrf.mxu1 }
 0x10f   : > { %v807_v18 = vpop.f32.mrf.mxu1 }
 0x111   : > { %v811_v19 = vpop.f32.mrf.mxu1 }
 0x113   : > { %v813_v21 = vpop.f32.mrf.mxu1 }
 0x115   : > { %v2952_v24 = vpop.f32.mrf.mxu1 }
 0x117   : > { %v2955_v27 = vpop.f32.mrf.mxu1 }
 0x119   : > { %v821_v30 = vpop.f32.mrf.mxu1 }
 0x11b   : > { %v823_v34 = vpop.f32.mrf.mxu1 }
 0x11d   : > { %v825_v38 = vpop.f32.mrf.mxu1 }
 0x11e   : > { %v720_v25 = vpop.f32.mrf.mxu0  ;;  %v2569_v38 = vld [vmem:[%s3156_s5 + $0x64] ss:$8 sps:$4 sm:$0xff]  }
 0x11f   : > { %v826_v42 = vpop.f32.mrf.mxu1  ;;  %v2540_v25 = vld [vmem:[#allocation2 + $0x250] ss:$8 sps:$4 sm:$0xff]  }
 0x120   : > { %v722_v28 = vpop.f32.mrf.mxu0 }
 0x122   : > { %v724_v31 = vpop.f32.mrf.mxu0 }
 0x123   : > { %v725_v32 = vadd.f32 %v724_v31, %v439_v26 }
 0x124   : > { %v726_v35 = vpop.f32.mrf.mxu0 }
 0x125   : > { %v796_v36 = vadd.f32 %v795_v11, %v725_v32  ;;  %v727_v37 = vadd.f32 %v726_v35, %v443_v29  ;;  %v2545_v32 = vld [vmem:[#allocation2 + $0x244] ss:$8 sps:$4 sm:$0xff]  }
 0x126   : > { %v730_v39 = vpop.f32.mrf.mxu0 }
 0x127   : > { %v798_v40 = vadd.f32 %v797_v12, %v727_v37  ;;  %v731_v41 = vadd.f32 %v730_v39, %v439_v26  ;;  %v830_v44 = vmax.f32 %v796_v36, 0.0  ;;  %v857_v12 = vadd.s32 4294967288, %v849_v62 }
 0x128   : > { %v732_v43 = vpop.f32.mrf.mxu0 }
 0x129   : > { %v831_v45 = vmax.f32 %v798_v40, 0.0  ;;  %v733_v46 = vadd.f32 %v732_v43, %v443_v29  ;;  %v802_v47 = vadd.f32 %v801_v13, %v731_v41  ;;  %v2960_v56 = vpack.c.bf16 %v830_v44, %v2664_v53  ;;  %v2543_v40 = vld [vmem:[#allocation2 + $0x240] ss:$8 sps:$4 sm:$0xff]   ;;  %v2548_v43 = vld [vmem:[#allocation2 + $0x234] ss:$8 sps:$4 sm:$0xff]  }
 0x12a   : > { %v734_v48 = vpop.f32.mrf.mxu0  ;;  %vm871_vm2 = vcmp.lt.s32.totalorder %v857_v12, 36  ;;  %v2585_v12 = vld [vmem:[%s3156_s5 + $0x30] ss:$8 sps:$4 sm:$0xff]   ;;  %v2666_v44 = vmov 0.0|0.0  }
 0x12b   : > { %v735_v49 = vadd.f32 %v734_v48, %v439_v26  ;;  %v804_v50 = vadd.f32 %v803_v15, %v733_v46  ;;  %v2958_v54 = vpack.c.bf16 %v831_v45, %v2664_v53  ;;  %v832_v57 = vmax.f32 %v802_v47, 0.0  ;;  %vm2987_vm4 = vmpackc.low %vm871_vm2, %vm2665_vm3  ;;  %v2567_v46 = vld [vmem:[%s3156_s5 + $0x60] ss:$8 sps:$4 sm:$0xff]   ;;  %v2575_v53 = vld [vmem:[%s3156_s5 + $0x54] ss:$8 sps:$4 sm:$0xff]  }
 0x12c   : > { %v736_v51 = vpop.f32.mrf.mxu0  ;;  %v922_v34 = vrot.slane %v2960_v56, 2 }
 0x12d   : > { %v737_v58 = vadd.f32 %v736_v51, %v443_v29  ;;  %v806_v59 = vadd.f32 %v805_v16, %v735_v49  ;;  %1580 = vmatprep.mubr.bf16.mxu1 %v2958_v54  ;;  %v833_v1 = vmax.f32 %v804_v50, 0.0  ;;  %v925_v30 = vrot.slane %v2958_v54, 2 }
 0x12e   : > { %v740_v61 = vpop.f32.mrf.mxu0  ;;  %1581 = vmatmul.mubr.bf16.vlgmr.msra.gmra.mxu1 %v2960_v56 }
 0x12f   : > { %v834_v2 = vmax.f32 %v806_v59, 0.0  ;;  %v741_v3 = vadd.f32 %v740_v61, %v439_v26  ;;  %v808_v4 = vadd.f32 %v807_v18, %v737_v58  ;;  %1675 = vmatpush1.bf16.msra.mxu1 %v2528_v55  ;;  %v2551_v61 = vld [vmem:[#allocation2 + $0x224] ss:$8 sps:$4 sm:$0xff]  }
 0x130   : > { %v742_v5 = vpop.f32.mrf.mxu0  ;;  %1676 = vmatprep.subr.bf16.mxu1 %v2536_v60  ;;  %v943_v60 = vrot.slane %v2958_v54, 4  ;;  %v2549_v54 = vld [vmem:[#allocation2 + $0x220] ss:$8 sps:$4 sm:$0xff]  }
 0x131   : > { %v2965_v7 = vpack.c.bf16 %v834_v2, %v832_v57  ;;  %v835_v8 = vmax.f32 %v808_v4, 0.0  ;;  %v743_v9 = vadd.f32 %v742_v5, %v443_v29  ;;  %v812_v14 = vadd.f32 %v811_v19, %v741_v3  ;;  %v2546_v57 = vld [vmem:[#allocation2 + $0x230] ss:$8 sps:$4 sm:$0xff]   ;;  %v2581_v5 = vld [vmem:[%s3156_s5 + $0x44] ss:$8 sps:$4 sm:$0xff]  }
 0x132   : > { %v744_v11 = vpop.f32.mrf.mxu0  ;;  %v2573_v3 = vld [vmem:[%s3156_s5 + $0x50] ss:$8 sps:$4 sm:$0xff]  }
 0x133   : > { %v2967_v13 = vpack.c.bf16 %v835_v8, %v833_v1  ;;  %v923_v15 = vrot.slane %v2965_v7, 2  ;;  %v745_v16 = vadd.f32 %v744_v11, %v439_v26  ;;  %v814_v18 = vadd.f32 %v813_v21, %v743_v9  ;;  %1677 = vmatpush1.bf16.msra.mxu1 %v2534_v6  ;;  %v2561_v21 = vld [vmem:[%s3156_s5 + $0x70] ss:$8 sps:$4 sm:$0xff]   ;;  %v2554_v6 = vld [vmem:[#allocation2 + $0x214] ss:$8 sps:$4 sm:$0xff]  }
 0x134   : > { %v746_v22 = vpop.f32.mrf.mxu0  ;;  %1678 = vmatprep.subr.bf16.mxu1 %v2542_v10  ;;  %v836_v35 = vmax.f32 %v812_v14, 0.0  ;;  %v2579_v8 = vld [vmem:[%s3156_s5 + $0x40] ss:$8 sps:$4 sm:$0xff]   ;;  %v2552_v9 = vld [vmem:[#allocation2 + $0x210] ss:$8 sps:$4 sm:$0xff]  }
 0x135   : > { %v747_v28 = vadd.f32 %v746_v22, %v443_v29  ;;  %1590 = vmatprep.mubr.bf16.mxu1 %v2967_v13  ;;  %v926_v31 = vrot.slane %v2967_v13, 2  ;;  %v816_v19 = vadd.f32 %v2952_v24, %v745_v16  ;;  %v837_v29 = vmax.f32 %v814_v18, 0.0  ;;  %v2587_v10 = vld [vmem:[%s3156_s5 + $0x34] ss:$8 sps:$4 sm:$0xff]   ;;  %v2557_v11 = vld [vmem:[#allocation2 + $0x204] ss:$8 sps:$4 sm:$0xff]  }
 0x136   : > { %v750_v26 = vpop.f32.mrf.mxu0  ;;  %1591 = vmatmul.mubr.bf16.gmra.mxu1 %v2965_v7  ;;  %v924_v24 = vsel %vm362_vm0, %v922_v34, %v923_v15  ;;  %v944_v45 = vrot.slane %v2967_v13, 4  ;;  %v2555_v14 = vld [vmem:[#allocation2 + $0x200] ss:$8 sps:$4 sm:$0xff]   ;;  %v2560_v16 = vld [vmem:[#allocation2 + $0x2f4] ss:$8 sps:$4 sm:$0xff]  }
 0x137   : > { %v818_v36 = vadd.f32 %v2955_v27, %v747_v28  ;;  %v927_v37 = vsel %vm362_vm0, %v925_v30, %v926_v31  ;;  %v838_v39 = vmax.f32 %v816_v19, 0.0  ;;  %1679 = vmatpush1.bf16.msra.mxu1 %v2540_v25  ;;  %v2591_v18 = vld [vmem:[%s3156_s5 + $0x20] ss:$8 sps:$4 sm:$0xff]   ;;  %v2558_v22 = vld [vmem:[#allocation2 + $0x2f0] ss:$8 sps:$4 sm:$0xff]  }
 0x138   : > { %1643 = vmatprep.mubr.bf16.mxu0 %v927_v37  ;;  %v752_v41 = vpop.f32.mrf.mxu0  ;;  %1680 = vmatprep.subr.bf16.mxu1 %v2545_v32  ;;  %v945_v1 = vsel %vm374_vm1, %v943_v60, %v944_v45  ;;  %v2599_v25 = vld [vmem:[%s3156_s5 + $0x14] ss:$8 sps:$4 sm:$0xff]   ;;  %v2566_v28 = vld [vmem:[#allocation2 + $0x2e4] ss:$8 sps:$4 sm:$0xff]   ;;  %v2597_v30 = vld [vmem:[%s3156_s5 + $0x10] ss:$8 sps:$4 sm:$0xff]  }
 0x139   : > { %v839_v42 = vmax.f32 %v818_v36, 0.0  ;;  %1644 = vmatmul.mubr.bf16.vlgmr.msra.gmra.mxu0 %v924_v24  ;;  %v904_v27 = vsel %vm871_vm2, %v838_v39, 0.0  ;;  %v2288_v49 = vpack.c.bf16 %v838_v39, %v836_v35  ;;  %v2605_v32 = vld [vmem:[%s3156_s5 + $0x4] ss:$8 sps:$4 sm:$0xff]   ;;  %v2572_v34 = vld [vmem:[#allocation2 + $0x2d4] ss:$8 sps:$4 sm:$0xff]  }
 0x13a   : > { %1858 = vmatpush1.bf16.msra.mxu0 %v2561_v21  ;;  %v754_v47 = vpop.f32.mrf.mxu0  ;;  %v2995_v48 = vpack.c.bf16 %v904_v27, %v836_v35  ;;  %v2603_v19 = vld [vmem:[%s3156_s5] ss:$8 sps:$4 sm:$0xff]   ;;  %v2570_v21 = vld [vmem:[#allocation2 + $0x2d0] ss:$8 sps:$4 sm:$0xff]   ;;  %v2578_v26 = vld [vmem:[#allocation2 + $0x2c4] ss:$8 sps:$4 sm:$0xff]  }
 0x13b   : > { %v905_v50 = vsel %vm871_vm2, %v839_v42, 0.0  ;;  %v2285_v51 = vpack.c.bf16 %v839_v42, %v837_v29  ;;  %1859 = vmatprep.subr.bf16.mxu0 %v2569_v38  ;;  %1681 = vmatpush1.bf16.msra.mxu1 %v2543_v40  ;;  %v2576_v35 = vld [vmem:[#allocation2 + $0x2c0] ss:$8 sps:$4 sm:$0xff]   ;;  %v2582_v36 = vld [vmem:[#allocation2 + $0x2b0] ss:$8 sps:$4 sm:$0xff]   ;;  %v941_v41 = vrot.slane %v2965_v7, 4 }
 0x13c   : > { %v3001_v55 = vpack.c.bf16 %v905_v50, %v837_v29  ;;  %v755_v58 = vpop.f32.mrf.mxu0  ;;  %v928_v59 = vrot.slane %v2995_v48, 2  ;;  %1682 = vmatprep.subr.bf16.mxu1 %v2548_v43  ;;  %v2584_v29 = vld [vmem:[#allocation2 + $0x2b4] ss:$8 sps:$4 sm:$0xff]   ;;  %v2590_v37 = vld [vmem:[#allocation2 + $0x2a4] ss:$8 sps:$4 sm:$0xff]   ;;  %v940_v43 = vrot.slane %v2960_v56, 4 }
 0x13d   : > { %2286 = vmatprep.mubr.msk.bf16.mxu1 %vm2987_vm4, %v2285_v51  ;;  %v2588_v38 = vld [vmem:[#allocation2 + $0x2a0] ss:$8 sps:$4 sm:$0xff]   ;;  %v2596_v39 = vld [vmem:[#allocation2 + $0x294] ss:$8 sps:$4 sm:$0xff]   ;;  %v2594_v24 = vld [vmem:[#allocation2 + $0x290] ss:$8 sps:$4 sm:$0xff]  }
 0x13e   : > { %v930_v62 = vrot.slane %v3001_v55, 2  ;;  %1860 = vmatpush1.bf16.msra.mxu0 %v2567_v46  ;;  %2289 = vmatmul.mubr.msk.bf16.gmra.mxu1 %vm2987_vm4, %v2288_v49  ;;  %v929_v2 = vsel %vm362_vm0, %v923_v15, %v928_v59  ;;  %v2593_v15 = vld [vmem:[%s3156_s5 + $0x24] ss:$8 sps:$4 sm:$0xff]   ;;  %v948_v42 = vrot.slane %v3001_v55, 4  ;;  %v946_v27 = vrot.slane %v2995_v48, 4 }
 0x13f   : > { %1861 = vmatprep.subr.bf16.mxu0 %v2575_v53  ;;  %1683 = vmatpush1.bf16.msra.mxu1 %v2546_v57  ;;  %v2602_v40 = vld [vmem:[#allocation2 + $0x284] ss:$8 sps:$4 sm:$0xff]   ;;  %v950_v46 = vrot.slane %v2666_v44, 4 }
 0x140   : > { %1706 = vmatprep.mubr.bf16.mxu1 %v945_v1  ;;  %v931_v4 = vsel %vm362_vm0, %v926_v31, %v930_v62  ;;  %1684 = vmatprep.subr.bf16.mxu1 %v2551_v61  ;;  %v2564_v31 = vld [vmem:[#allocation2 + $0x2e0] ss:$8 sps:$4 sm:$0xff]   ;;  %v947_v7 = vsel %vm374_vm1, %v941_v41, %v946_v27 }
 0x141   : > { %1653 = vmatprep.mubr.bf16.mxu0 %v931_v4  ;;  %v951_v56 = vsel %vm374_vm1, %v946_v27, %v950_v46 }
 0x142   : > { %1654 = vmatmul.mubr.bf16.gmra.mxu0 %v929_v2 }
 0x143   : > { %1663 = vmatprep.mubr.bf16.mxu0 %v930_v62  ;;  %1862 = vmatpush1.bf16.msra.mxu0 %v2573_v3 }
 0x144   : > { %1685 = vmatpush1.bf16.msra.mxu1 %v2549_v54  ;;  %1863 = vmatprep.subr.bf16.mxu0 %v2581_v5 }
 0x145   : > { %1686 = vmatprep.subr.bf16.mxu1 %v2554_v6 }
 0x147   : > { %1864 = vmatpush1.bf16.msra.mxu0 %v2579_v8 }
 0x148   : > { %1687 = vmatpush1.bf16.msra.mxu1 %v2552_v9  ;;  %1865 = vmatprep.subr.bf16.mxu0 %v2587_v10 }
 0x149   : > { %1688 = vmatprep.subr.bf16.mxu1 %v2557_v11 }
 0x14a   : > { %1664 = vmatmul.mubr.bf16.gmra.mxu0 %v928_v59 }
 0x14b   : > { %1866 = vmatpush1.bf16.msra.mxu0 %v2585_v12  ;;  %1889 = vmatprep.mubr.bf16.mxu0 %v2663_v0 }
 0x14c   : > { %1689 = vmatpush1.bf16.msra.mxu1 %v2555_v14  ;;  %1867 = vmatprep.subr.bf16.mxu0 %v2593_v15  ;;  %v1056_v14 = vld [vmem:[%s3155_s4] sm:$0x3] }
 0x14d   : > { %1690 = vmatprep.subr.bf16.mxu1 %v2560_v16 }
 0x14f   : > { %1868 = vmatpush1.bf16.msra.mxu0 %v2591_v18  ;;  %v3087_v18 = vrot.slane %v1056_v14, %v2944_v20 }
 0x150   : > { %1691 = vmatpush2.bf16.msra.mxu1 %v2558_v22  ;;  %1869 = vmatprep.subr.bf16.mxu0 %v2599_v25 }
 0x151   : > { %1692 = vmatprep.subr.bf16.mxu1 %v2566_v28  ;;  %v1765_v28 = vld [vmem:[%s3157_s6] sm:$0x3] }
 0x153   : > { %1870 = vmatpush1.bf16.msra.mxu0 %v2597_v30  ;;  %v3097_v30 = vrot.slane %v1056_v14, %v2950_v23 }
 0x154   : > { %1693 = vmatpush2.bf16.msra.mxu1 %v2564_v31  ;;  %1871 = vmatprep.subr.bf16.mxu0 %v2605_v32 }
 0x155   : > { %1694 = vmatprep.subr.bf16.mxu1 %v2572_v34  ;;  %v1770_v34 = vrot.slane %v1765_v28, %v2944_v20 }
 0x157   : > { %1872 = vmatpush1.bf16.msra.mxu0 %v2603_v19 }
 0x158   : > { %1695 = vmatpush2.bf16.msra.mxu1 %v2570_v21 }
 0x159   : > { %1696 = vmatprep.subr.bf16.mxu1 %v2578_v26 }
 0x15a   : > { %1890 = vmatmul.mubr.bf16.vlgmr.msra.gmra.mxu0 %v2857_v33  ;;  %v2600_v33 = vld [vmem:[#allocation2 + $0x280] ss:$8 sps:$4 sm:$0xff]  }
 0x15b   : > { %1899 = vmatprep.mubr.bf16.mxu0 %v2663_v0 }
 0x15c   : > { %1697 = vmatpush2.bf16.msra.mxu1 %v2576_v35 }
 0x15d   : > { %1698 = vmatprep.subr.bf16.mxu1 %v2584_v29  ;;  %v1774_v29 = vrot.slane %v1765_v28, %v2950_v23 }
 0x160   : > { %1699 = vmatpush2.bf16.msra.mxu1 %v2582_v36 }
 0x161   : > { %1700 = vmatprep.subr.bf16.mxu1 %v2590_v37 }
 0x162   : > { %1900 = vmatmul.mubr.bf16.gmra.mxu0 %v2895_v52  ;;  %v942_v52 = vsel %vm374_vm1, %v940_v43, %v941_v41 }
 0x163   : > { %1909 = vmatprep.mubr.bf16.mxu0 %v2663_v0  ;;  %v949_v0 = vsel %vm374_vm1, %v944_v45, %v948_v42 }
 0x164   : > { %1701 = vmatpush2.bf16.msra.mxu1 %v2588_v38 }
 0x165   : > { %1702 = vmatprep.subr.bf16.mxu1 %v2596_v39 }
 0x168   : > { %1703 = vmatpush2.bf16.msra.mxu1 %v2594_v24 }
 0x169   : > { %1704 = vmatprep.subr.bf16.mxu1 %v2602_v40 }
 0x16a   : > { %1910 = vmatmul.mubr.bf16.gmra.mxu0 %v2913_v63  ;;  %v953_v63 = vsel %vm374_vm1, %v948_v42, %v950_v46  ;;  %v847_v46 = vadd.s32 24, %v2941_v17 }
 0x16c   : > { %1705 = vmatpush2.bf16.msra.mxu1 %v2600_v33  ;;  %vm1930_vm5 = vcmp.lt.s32.totalorder %v847_v46, 28 }
 0x16f   : > { %1707 = vmatmul.mubr.bf16.vlgmr.msra.gmra.mxu1 %v942_v52 }
 0x170   : > { %1716 = vmatprep.mubr.bf16.mxu1 %v949_v0 }
 0x177   : > { %1717 = vmatmul.mubr.bf16.gmra.mxu1 %v947_v7 }
 0x178   : > { %1726 = vmatprep.mubr.bf16.mxu1 %v953_v63 }
 0x17f   : > { %1727 = vmatmul.mubr.bf16.gmra.mxu1 %v951_v56 }
 0x1ee   : > { %v1582_v53 = vpop.f32.mrf.mxu1 }
 0x1ef   : > { %v1583_v32 = vadd.f32 %v1582_v53, %v3087_v18 }
 0x1f0   : > { %v1584_v55 = vpop.f32.mrf.mxu1 }
 0x1f1   : > { %v1585_v26 = vadd.f32 %v1584_v55, %v3097_v30 }
 0x1f2   : > { %v1586_v59 = vpop.f32.mrf.mxu1 }
 0x1f3   : > { %v1587_v38 = vadd.f32 %v1586_v59, %v3087_v18 }
 0x1f4   : > { %v1588_v61 = vpop.f32.mrf.mxu1 }
 0x1f5   : > { %v1589_v41 = vadd.f32 %v1588_v61, %v3097_v30 }
 0x1f6   : > { %v1592_v62 = vpop.f32.mrf.mxu1 }
 0x1f7   : > { %v1593_v20 = vadd.f32 %v1592_v62, %v3087_v18 }
 0x1f8   : > { %v1594_v2 = vpop.f32.mrf.mxu1 }
 0x1f9   : > { %v1645_v47 = vpop.f32.mrf.mxu0 }
 0x1fa   : > { %v1596_v4 = vpop.f32.mrf.mxu1  ;;  %v1646_v35 = vadd.f32 %v1645_v47, %v1583_v32 }
 0x1fb   : > { %v1647_v49 = vpop.f32.mrf.mxu0  ;;  %v1597_v55 = vadd.f32 %v1596_v4, %v3087_v18 }
 0x1fc   : > { %v1598_v8 = vpop.f32.mrf.mxu1  ;;  %v1648_v39 = vadd.f32 %v1647_v49, %v1585_v26  ;;  %v1595_v49 = vadd.f32 %v1594_v2, %v3097_v30 }
 0x1fd   : > { %v1649_v50 = vpop.f32.mrf.mxu0 }
 0x1fe   : > { %v1602_v10 = vpop.f32.mrf.mxu1  ;;  %v1650_v43 = vadd.f32 %v1649_v50, %v1587_v38 }
 0x1ff   : > { %v1651_v13 = vpop.f32.mrf.mxu0 }
 0x200   : > { %v3084_v15 = vpop.f32.mrf.mxu1  ;;  %v1652_v44 = vadd.f32 %v1651_v13, %v1589_v41  ;;  %v1599_v13 = vadd.f32 %v1598_v8, %v3097_v30 }
 0x202   : > { %v1655_v51 = vpop.f32.mrf.mxu0  ;;  %v3091_v25 = vpop.f32.mrf.mxu1 }
 0x203   : > { %v1656_v53 = vadd.f32 %v1655_v51, %v1593_v20  ;;  %v1603_v51 = vadd.f32 %v1602_v10, %v3087_v18 }
 0x204   : > { %v3065_v45 = vpop.f32.mrf.mxu0  ;;  %v3101_v21 = vpop.f32.mrf.mxu1 }
 0x205   : > { %v1658_v2 = vadd.f32 %v3065_v45, %v1595_v49 }
 0x206   : > { %v3067_v48 = vpop.f32.mrf.mxu0 }
 0x207   : > { %v1660_v32 = vadd.f32 %v3067_v48, %v1597_v55  ;;  %v1607_v48 = vadd.f32 %v3091_v25, %v3087_v18 }
 0x208   : > { %v3069_v57 = vpop.f32.mrf.mxu0 }
 0x20a   : > { %v3071_v58 = vpop.f32.mrf.mxu0 }
 0x20c   : > { %v3073_v60 = vpop.f32.mrf.mxu0 }
 0x20e   : > { %v3075_v1 = vpop.f32.mrf.mxu0 }
 0x210   : > { %v3077_v3 = vpop.f32.mrf.mxu0 }
 0x21a   : > { %v1891_v54 = vpop.f32.mrf.mxu0 }
 0x21b   : > { %v1892_v40 = vadd.f32 %v1891_v54, %v1770_v34 }
 0x21c   : > { %v1893_v5 = vpop.f32.mrf.mxu0 }
 0x21d   : > { %v1894_v27 = vadd.f32 %v1893_v5, %v1774_v29 }
 0x21e   : > { %v1895_v6 = vpop.f32.mrf.mxu0 }
 0x21f   : > { %v1896_v47 = vadd.f32 %v1895_v6, %v1770_v34 }
 0x220   : > { %v1897_v9 = vpop.f32.mrf.mxu0 }
 0x221   : > { %v1898_v54 = vadd.f32 %v1897_v9, %v1774_v29 }
 0x222   : > { %v1901_v11 = vpop.f32.mrf.mxu0 }
 0x223   : > { %v1902_v4 = vadd.f32 %v1901_v11, %v1770_v34 }
 0x224   : > { %v3079_v12 = vpop.f32.mrf.mxu0 }
 0x225   : > { %v1904_v10 = vadd.f32 %v3079_v12, %v1774_v29  ;;  %v1666_v12 = vadd.f32 %v3071_v58, %v1603_v51 }
 0x226   : > { %v1905_v16 = vpop.f32.mrf.mxu0 }
 0x227   : > { %v1906_v8 = vadd.f32 %v1905_v16, %v1770_v34 }
 0x228   : > { %v3089_v22 = vpop.f32.mrf.mxu0 }
 0x229   : > { %v1908_v38 = vadd.f32 %v3089_v22, %v1774_v29 }
 0x22a   : > { %v1911_v31 = vpop.f32.mrf.mxu0 }
 0x22c   : > { %v1913_v19 = vpop.f32.mrf.mxu0 }
 0x22e   : > { %v1915_v36 = vpop.f32.mrf.mxu0 }
 0x22f   : > { %v1708_v37 = vpop.f32.mrf.mxu1  ;;  %v1605_v36 = vadd.f32 %v3084_v15, %v3097_v30  ;;  %v1951_v15 = vsel %vm1930_vm5, %v1906_v8, 0.0 }
 0x230   : > { %v1709_v24 = vadd.f32 %v1708_v37, %v1646_v35  ;;  %v1917_v33 = vpop.f32.mrf.mxu0 }
 0x231   : > { %v1710_v42 = vpop.f32.mrf.mxu1 }
 0x232   : > { %v1737_v52 = vmax.f32 %v1709_v24, 0.0  ;;  %v1711_v0 = vadd.f32 %v1710_v42, %v1648_v39  ;;  %v1662_v39 = vadd.f32 %v3069_v57, %v1599_v13  ;;  %v1609_v57 = vadd.f32 %v3101_v21, %v3097_v30 }
 0x233   : > { %v1712_v23 = vpop.f32.mrf.mxu1  ;;  %v1952_v42 = vsel %vm1930_vm5, %v1908_v38, 0.0 }
 0x234   : > { %v1957_v7 = vadd.f32 %v1892_v40, %v1737_v52  ;;  %v1738_v63 = vmax.f32 %v1711_v0, 0.0  ;;  %v1713_v56 = vadd.f32 %v1712_v23, %v1650_v43  ;;  %v1668_v52 = vadd.f32 %v3073_v60, %v1605_v36 }
 0x235   : > { %v1714_v59 = vpop.f32.mrf.mxu1  ;;  %v1670_v23 = vadd.f32 %v3075_v1, %v1607_v48  ;;  %v1672_v21 = vadd.f32 %v3077_v3, %v1609_v57 }
 0x236   : > { %v1958_v61 = vadd.f32 %v1894_v27, %v1738_v63  ;;  %v1739_v50 = vmax.f32 %v1713_v56, 0.0  ;;  %v1715_v62 = vadd.f32 %v1714_v59, %v1652_v44  ;;  %v1969_v5 = vmax.f32 %v1957_v7, 0.0 }
 0x237   : > { %v1718_v14 = vpop.f32.mrf.mxu1 }
 0x238   : > { %v1970_v17 = vmax.f32 %v1958_v61, 0.0  ;;  %v1959_v28 = vadd.f32 %v1896_v47, %v1739_v50  ;;  %v1740_v31 = vmax.f32 %v1715_v62, 0.0  ;;  %v1719_v6 = vadd.f32 %v1718_v14, %v1656_v53 }
 0x239   : > { %v1720_v9 = vpop.f32.mrf.mxu1 }
 0x23a   : > { %v2314_v19 = vpack.c.bf16 %v1970_v17, %v1969_v5  ;;  %v1960_v26 = vadd.f32 %v1898_v54, %v1740_v31  ;;  %v1741_v35 = vmax.f32 %v1719_v6, 0.0  ;;  %v1721_v45 = vadd.f32 %v1720_v9, %v1658_v2 }
 0x23b   : > { %v1722_v37 = vpop.f32.mrf.mxu1  ;;  %v1971_v11 = vmax.f32 %v1959_v28, 0.0 }
 0x23c   : > { %2017 = vst [vmem:[%s3118_s23] sm:$0xff] %v2314_v19  ;;  %v1972_v24 = vmax.f32 %v1960_v26, 0.0  ;;  %v1723_v16 = vadd.f32 %v1722_v37, %v1660_v32  ;;  %v1961_v34 = vadd.f32 %v1902_v4, %v1741_v35  ;;  %v1742_v40 = vmax.f32 %v1721_v45, 0.0 }
 0x23d   : > { %v1724_v33 = vpop.f32.mrf.mxu1 }
 0x23e   : > { %v2315_v41 = vpack.c.bf16 %v1972_v24, %v1971_v11  ;;  %v1743_v20 = vmax.f32 %v1723_v16, 0.0  ;;  %v1725_v22 = vadd.f32 %v1724_v33, %v1662_v39  ;;  %v1962_v29 = vadd.f32 %v1904_v10, %v1742_v40 }
 0x23f   : > { %v1728_v43 = vpop.f32.mrf.mxu1  ;;  %v1973_v27 = vmax.f32 %v1961_v34, 0.0 }
 0x240   : > { %2018 = vst [vmem:[%s3118_s23 + $0x8] sm:$0xff] %v2315_v41  ;;  %v1963_v18 = vadd.f32 %v1951_v15, %v1743_v20  ;;  %v1744_v25 = vmax.f32 %v1725_v22, 0.0  ;;  %v1729_v0 = vadd.f32 %v1728_v43, %v1666_v12  ;;  %v1974_v44 = vmax.f32 %v1962_v29, 0.0 }
 0x241   : > { %v1730_v58 = vpop.f32.mrf.mxu1 }
 0x242   : > { %v1964_v7 = vadd.f32 %v1952_v42, %v1744_v25  ;;  %v1745_v63 = vmax.f32 %v1729_v0, 0.0  ;;  %v1731_v30 = vadd.f32 %v1730_v58, %v1668_v52  ;;  %v2316_v46 = vpack.c.bf16 %v1974_v44, %v1973_v27 }
 0x243   : > { %v1732_v56 = vpop.f32.mrf.mxu1  ;;  %v1975_v60 = vmax.f32 %v1963_v18, 0.0 }
 0x244   : > { %v1976_v47 = vmax.f32 %v1964_v7, 0.0  ;;  %v1746_v49 = vmax.f32 %v1731_v30, 0.0  ;;  %v1733_v53 = vadd.f32 %v1732_v56, %v1670_v23  ;;  %2019 = vst [vmem:[%s3118_s23 + $0x10] sm:$0xff] %v2316_v46  ;;  %v1977_v55 = vmax.f32 %v1745_v63, 0.0 }
 0x245   : > { %v1734_v59 = vpop.f32.mrf.mxu1 }
 0x246   : > { %v2317_v61 = vpack.c.bf16 %v1976_v47, %v1975_v60  ;;  %v1978_v50 = vmax.f32 %v1746_v49, 0.0  ;;  %v1747_v1 = vmax.f32 %v1733_v53, 0.0  ;;  %v1735_v62 = vadd.f32 %v1734_v59, %v1672_v21 }
 0x248   : > { %2020 = vst [vmem:[%s3118_s23 + $0x18] sm:$0xff] %v2317_v61  ;;  %v2318_v54 = vpack.c.bf16 %v1978_v50, %v1977_v55  ;;  %v1748_v13 = vmax.f32 %v1735_v62, 0.0  ;;  %v1979_v3 = vmax.f32 %v1747_v1, 0.0 }
 0x24a   : > { %2021 = vst [vmem:[%s3118_s23 + $0x20] sm:$0xff] %v2318_v54  ;;  %v1980_v5 = vmax.f32 %v1748_v13, 0.0 }
 0x24c   : > { %v2319_v14 = vpack.c.bf16 %v1980_v5, %v1979_v3 }
 0x24e   : > { %2022 = vst [vmem:[%s3118_s23 + $0x28] sm:$0x33] %v2319_v14 }
 0x24f PF: > { %s18_s26 = sadd.s32 1, %s2658_s26   ;;  %s3163_s24 = smov %s2654_s25 }
 0x250   : > { %p15_p2 = scmp.ge.s32.totalorder %s18_s26, 4   ;;  %s3164_s25 = smov %s3166_s28 }
 0x252   :  { %17 = sbr.rel (!%p15_p2) target bundleno = 2 (0x2), region = 83 }
 0x257   :  { %2055 = vsyncpa [#allocation3], 1 }
 0x258   :  { %2057 = vsyncpa [#allocation3 + $0x1], 1 }

</bundles_post_ra>
